<compile_context>
chip_gen: v6e
topology: v6e:2x2x1
jax: 0.10.0
libtpu: 0.0.40
codegen_flags: <defaults>
</compile_context>

<pallas_src>
import functools
import math

import jax
import jax.numpy as jnp
from jax import lax
from jax.experimental import pallas as pl
from jax.experimental.pallas import tpu as pltpu


def _cross_attention_kernel(
    q_ref, k_ref, v_ref,
    wq_ref, bq_ref,
    wk_ref, bk_ref,
    wv_ref, bv_ref,
    o_ref,
    *, compute_dtype,
):
    Bt, Lq, Dq = q_ref.shape
    _, Lk, Dk = k_ref.shape
    Do = o_ref.shape[-1]
    cd = compute_dtype

    # One fused projection matmul per stream on (Bt*L, D) row slabs.  Inputs
    # and weights already arrive in the compute dtype (pre-cast in wrapper);
    # accumulate in f32 on the MXU, add the f32 bias, and keep only the
    # compute-dtype copy of each projection live.
    q2 = q_ref[...].reshape(Bt * Lq, Dq)
    k2 = k_ref[...].reshape(Bt * Lk, Dk)
    v2 = v_ref[...].reshape(Bt * Lk, Dk)

    q = (jnp.dot(q2, wq_ref[...], preferred_element_type=jnp.float32)
         + bq_ref[...]).astype(cd).reshape(Bt, Lq, Do)
    k = (jnp.dot(k2, wk_ref[...], preferred_element_type=jnp.float32)
         + bk_ref[...]).astype(cd).reshape(Bt, Lk, Do)
    v = (jnp.dot(v2, wv_ref[...], preferred_element_type=jnp.float32)
         + bv_ref[...]).astype(cd).reshape(Bt, Lk, Do)

    # Scaled scores: scale pre-folded into wq/bq; contraction over Do with
    # batch dim 0 -> no k transpose / XLU shuffle.
    scores = lax.dot_general(
        q, k, dimension_numbers=(((2,), (2,)), ((0,), (0,))),
        preferred_element_type=jnp.float32)                    # (Bt, Lq, Lk) f32

    # Numerically-stable softmax, kept in f32; reciprocal routed to the EUP.
    m = jnp.max(scores, axis=-1, keepdims=True)
    e = jnp.exp(scores - m)
    denom = jnp.sum(e, axis=-1, keepdims=True)
    attn = (e * pl.reciprocal(denom, approx=True)).astype(cd)  # (Bt, Lq, Lk)

    out = lax.dot_general(
        attn, v, dimension_numbers=(((2,), (1,)), ((0,), (0,))),
        preferred_element_type=jnp.float32)                    # (Bt, Lq, Do) f32

    # Dropout: identity (eval mode).
    o_ref[...] = out.astype(o_ref.dtype)


def _vmem_estimate_bytes(bt, Lq, Lk, Dq, Dk, Do, in_b, w_b, cd_b, out_b):
    """Rough per-step working-set estimate used for tile selection / vmem limit."""
    io = 2 * bt * (Lq * Dq + 2 * Lk * Dk) * in_b       # double-buffered q/k/v tiles
    io += 2 * bt * Lq * Do * out_b                      # double-buffered output tile
    w = (Dq + 2 * Dk) * Do * w_b + 3 * Do * 4           # single-buffered weights + biases
    proj = bt * (Lq + 2 * Lk) * Do * cd_b                # projected q/k/v (compute dtype)
    scores = bt * Lq * Lk * (4 + 4 + cd_b)               # scores + exp (f32) + attn (cd)
    return io + w + proj + scores


def _pick_batch_tile(B, fits):
    """Largest divisor of B that fits the VMEM budget, preferring >=4 and an
    even number of grid steps (>= 2 pipelined steps per TensorCore on v7x)."""
    divisors = [d for d in range(1, B + 1) if B % d == 0]

    def score(bt):
        n = B // bt
        return (bool(fits(bt)), n >= 4, n % 2 == 0, bt)

    return max(divisors, key=score)


def cross_attention(query, key, value, params, *, batch_tile=None,
                    compute_dtype=None, out_dtype=jnp.float32):
    """query: (B, Lq, Dq); key/value: (B, Lk, Dk). Returns (B, Lq, Do)."""
    B, Lq, Dq = query.shape
    Bk, Lk, Dk = key.shape
    assert Bk == B and key.shape == value.shape

    (wt_text, b_text, wt_extra, b_extra,
     wt_q, b_q, wt_k, b_k, wt_v, b_v) = params

    # ---- Algebraic fusion of the two-stage linears (exact, in f32).
    # Module semantics: text_linear only if query dim != 768; extra_linear only
    # if key dim != 768 (applied to BOTH key and value).
    if Dq != 768:
        wq_f = wt_text @ wt_q
        bq_f = b_text @ wt_q + b_q
    else:
        wq_f, bq_f = wt_q, b_q
    if Dk != 768:
        wk_f = wt_extra @ wt_k
        bk_f = b_extra @ wt_k + b_k
        wv_f = wt_extra @ wt_v
        bv_f = b_extra @ wt_v + b_v
    else:
        wk_f, bk_f = wt_k, b_k
        wv_f, bv_f = wt_v, b_v

    Do = wq_f.shape[-1]
    assert wq_f.shape == (Dq, Do)
    assert wk_f.shape == (Dk, Do) and wv_f.shape == (Dk, Do)

    # Fold the softmax scale 1/sqrt(d_k) into the fused query weight/bias,
    # where d_k is the projected key dim (key_proj output dim) -- this matches
    # the reference's key.size(-1) taken AFTER projection.
    scale = 1.0 / math.sqrt(float(wk_f.shape[-1]))
    wq_f = wq_f * scale
    bq_f = bq_f * scale

    # bf16-in / f32-accumulate matmuls only pay off at realistic sizes.
    if compute_dtype is None:
        compute_dtype = jnp.bfloat16 if Do >= 256 else jnp.float32
    cd = jnp.dtype(compute_dtype)

    # Cast ONCE in the wrapper (fusion math above stayed f32): halves weight &
    # activation HBM->VMEM DMA in the bf16 path and removes all operand casts
    # from the kernel.  Biases stay f32 (added to the f32 MXU accumulation).
    wq_f, wk_f, wv_f = (w.astype(cd) for w in (wq_f, wk_f, wv_f))
    bq_f, bk_f, bv_f = (b.astype(jnp.float32) for b in (bq_f, bk_f, bv_f))
    q_in, k_in, v_in = (x.astype(cd) for x in (query, key, value))

    in_b = w_b = cd_b = cd.itemsize
    out_b = jnp.dtype(out_dtype).itemsize
    est = functools.partial(_vmem_estimate_bytes, Lq=Lq, Lk=Lk, Dq=Dq, Dk=Dk,
                            Do=Do, in_b=in_b, w_b=w_b, cd_b=cd_b, out_b=out_b)

    budget = 40 * 1024 * 1024
    if batch_tile is None:
        batch_tile = _pick_batch_tile(B, lambda bt: est(bt) <= budget)
    assert B % batch_tile == 0, "batch_tile must divide B"
    num_tiles = B // batch_tile

    # Explicit scoped-VMEM limit from the estimate: v5e's default is only
    # 16 MiB; capped at 48 MiB which is safe on v7x's 64 MiB physical VMEM.
    vmem_limit = int(min(max(2 * est(batch_tile), 16 * 1024 * 1024),
                         48 * 1024 * 1024))

    kernel = functools.partial(_cross_attention_kernel, compute_dtype=cd)

    def run(weight_pipeline_mode):
        wkw = ({} if weight_pipeline_mode is None
               else {"pipeline_mode": weight_pipeline_mode})
        qkv_spec = lambda L, D: pl.BlockSpec((batch_tile, L, D),
                                             lambda t: (t, 0, 0))
        w_spec = lambda D_in: pl.BlockSpec((D_in, Do), lambda t: (0, 0), **wkw)
        b_spec = lambda: pl.BlockSpec((1, Do), lambda t: (0, 0), **wkw)
        return pl.pallas_call(
            kernel,
            out_shape=jax.ShapeDtypeStruct((B, Lq, Do), out_dtype),
            grid_spec=pltpu.PrefetchScalarGridSpec(
                num_scalar_prefetch=0,
                grid=(num_tiles,),
                in_specs=[
                    qkv_spec(Lq, Dq), qkv_spec(Lk, Dk), qkv_spec(Lk, Dk),
                    w_spec(Dq), b_spec(),   # fused query path (scale folded in)
                    w_spec(Dk), b_spec(),   # fused key path
                    w_spec(Dk), b_spec(),   # fused value path
                ],
                out_specs=pl.BlockSpec((batch_tile, Lq, Do),
                                       lambda t: (t, 0, 0)),
            ),
            compiler_params=pltpu.CompilerParams(
                dimension_semantics=("parallel",),
                vmem_limit_bytes=vmem_limit),
        )(q_in, k_in, v_in, wq_f, bq_f, wk_f, bk_f, wv_f, bv_f)

    # Weights/biases have constant index maps, so the second pipeline buffer is
    # pure VMEM waste: request single buffering, falling back to the default
    # (double-buffered) spec if this JAX build rejects Buffered(1).
    try:
        return run(pl.Buffered(1))
    except Exception:   # pragma: no cover - fall back to default buffering
        return run(None)


def init_params(key, feature_dim):
    """Deterministic nn.Linear-style init; weights pre-transposed to (D_in, D_out)."""
    bound = 1.0 / math.sqrt(feature_dim)
    names = ["text", "extra", "q", "k", "v"]
    keys = jax.random.split(key, 2 * len(names))
    params = []
    for i, _ in enumerate(names):
        w = jax.random.uniform(keys[2 * i], (feature_dim, feature_dim),
                               jnp.float32, -bound, bound)
        b = jax.random.uniform(keys[2 * i + 1], (1, feature_dim),
                               jnp.float32, -bound, bound)
        params.append(w.T)   # kernel/wrapper compute x @ W_t
        params.append(b)
    return tuple(params)


def reference_jax(query, key, value, params):
    """Unfused pure-JAX reference matching the PyTorch module (eval mode)."""
    (wt_text, b_text, wt_extra, b_extra,
     wt_q, b_q, wt_k, b_k, wt_v, b_v) = params
    q, k, v = query, key, value
    if q.shape[-1] != 768:
        q = q @ wt_text + b_text
    if k.shape[-1] != 768:
        k = k @ wt_extra + b_extra
        v = v @ wt_extra + b_extra
    q = q @ wt_q + b_q
    k = k @ wt_k + b_k
    v = v @ wt_v + b_v
    scores = jnp.einsum("bqd,bkd->bqk", q, k) / jnp.sqrt(jnp.float32(k.shape[-1]))
    w = jax.nn.softmax(scores, axis=-1)
    return jnp.einsum("bqk,bkd->bqd", w, v)


if __name__ == "__main__":
    B, Lq, Lk, D = 2, 8, 8, 32   # feature_dim = 32 (!= 768 -> both branch linears run)

    root = jax.random.PRNGKey(0)
    k_params, k_q, k_k, k_v = jax.random.split(root, 4)

    params = init_params(k_params, D)
    query = jax.random.normal(k_q, (B, Lq, D), jnp.float32)
    key_t = jax.random.normal(k_k, (B, Lk, D), jnp.float32)
    value = jax.random.normal(k_v, (B, Lk, D), jnp.float32)

    out = cross_attention(query, key_t, value, params)
    out = jax.block_until_ready(out)

    ref = reference_jax(query, key_t, value, params)
    assert out.shape == (B, Lq, D)
    # approx reciprocal + weight-fusion reassociation: slightly looser tolerance.
    assert jnp.allclose(out, ref, atol=2e-3, rtol=2e-3), "mismatch vs reference"

    print("KERNEL_OK")
</pallas_src>

<mosaic_0001>
module attributes {stable_mosaic.version = 11 : i64} {
  func.func @_cross_attention_kernel(%arg0: i32, %arg1: memref<1x8x32xf32, #tpu.memory_space<vmem>>, %arg2: memref<1x8x32xf32, #tpu.memory_space<vmem>>, %arg3: memref<1x8x32xf32, #tpu.memory_space<vmem>>, %arg4: memref<32x32xf32, #tpu.memory_space<vmem>>, %arg5: memref<1x32xf32, #tpu.memory_space<vmem>>, %arg6: memref<32x32xf32, #tpu.memory_space<vmem>>, %arg7: memref<1x32xf32, #tpu.memory_space<vmem>>, %arg8: memref<32x32xf32, #tpu.memory_space<vmem>>, %arg9: memref<1x32xf32, #tpu.memory_space<vmem>>, %arg10: memref<1x8x32xf32, #tpu.memory_space<vmem>>) attributes {dimension_semantics = [#tpu.dimension_semantics<parallel>], iteration_bounds = array<i64: 2>, scalar_prefetch = 0 : i64, scratch_operands = 0 : i64, tpu.core_type = #tpu.core_type<tc>, window_params = [{transform_indices = @transform_0, window_bounds = array<i64: 1, 8, 32>}, {transform_indices = @transform_1, window_bounds = array<i64: 1, 8, 32>}, {transform_indices = @transform_2, window_bounds = array<i64: 1, 8, 32>}, {pipeline_mode = #tpu.pipeline_mode<synchronous>, transform_indices = @transform_3, window_bounds = array<i64: 32, 32>}, {pipeline_mode = #tpu.pipeline_mode<synchronous>, transform_indices = @transform_4, window_bounds = array<i64: 1, 32>}, {pipeline_mode = #tpu.pipeline_mode<synchronous>, transform_indices = @transform_5, window_bounds = array<i64: 32, 32>}, {pipeline_mode = #tpu.pipeline_mode<synchronous>, transform_indices = @transform_6, window_bounds = array<i64: 1, 32>}, {pipeline_mode = #tpu.pipeline_mode<synchronous>, transform_indices = @transform_7, window_bounds = array<i64: 32, 32>}, {pipeline_mode = #tpu.pipeline_mode<synchronous>, transform_indices = @transform_8, window_bounds = array<i64: 1, 32>}, {transform_indices = @transform_9, window_bounds = array<i64: 1, 8, 32>}]} {
    %c0 = arith.constant 0 : index
    %c0_0 = arith.constant 0 : index
    %c0_1 = arith.constant 0 : index
    %0 = vector.load %arg1[%c0, %c0_0, %c0_1] : memref<1x8x32xf32, #tpu.memory_space<vmem>>, vector<1x8x32xf32>
    %1 = vector.shape_cast %0 : vector<1x8x32xf32> to vector<8x32xf32>
    %c0_2 = arith.constant 0 : index
    %c0_3 = arith.constant 0 : index
    %c0_4 = arith.constant 0 : index
    %2 = vector.load %arg2[%c0_2, %c0_3, %c0_4] : memref<1x8x32xf32, #tpu.memory_space<vmem>>, vector<1x8x32xf32>
    %3 = vector.shape_cast %2 : vector<1x8x32xf32> to vector<8x32xf32>
    %c0_5 = arith.constant 0 : index
    %c0_6 = arith.constant 0 : index
    %c0_7 = arith.constant 0 : index
    %4 = vector.load %arg3[%c0_5, %c0_6, %c0_7] : memref<1x8x32xf32, #tpu.memory_space<vmem>>, vector<1x8x32xf32>
    %5 = vector.shape_cast %4 : vector<1x8x32xf32> to vector<8x32xf32>
    %c0_8 = arith.constant 0 : index
    %c0_9 = arith.constant 0 : index
    %6 = vector.load %arg4[%c0_8, %c0_9] : memref<32x32xf32, #tpu.memory_space<vmem>>, vector<32x32xf32>
    %cst = arith.constant dense<0.000000e+00> : vector<8x32xf32>
    %7 = tpu.matmul %1, %6, %cst {dimension_numbers = #tpu.dot_dimension_numbers<[1], [0], [0], [1], [0, 0, 1, 1], [], []>} : vector<8x32xf32>, vector<32x32xf32>, vector<8x32xf32> -> vector<8x32xf32>
    %c0_10 = arith.constant 0 : index
    %c0_11 = arith.constant 0 : index
    %8 = vector.load %arg5[%c0_10, %c0_11] : memref<1x32xf32, #tpu.memory_space<vmem>>, vector<1x32xf32>
    %9 = vector.broadcast %8 : vector<1x32xf32> to vector<8x32xf32>
    %10 = arith.addf %7, %9 : vector<8x32xf32>
    %11 = vector.shape_cast %10 : vector<8x32xf32> to vector<1x8x32xf32>
    %c0_12 = arith.constant 0 : index
    %c0_13 = arith.constant 0 : index
    %12 = vector.load %arg6[%c0_12, %c0_13] : memref<32x32xf32, #tpu.memory_space<vmem>>, vector<32x32xf32>
    %cst_14 = arith.constant dense<0.000000e+00> : vector<8x32xf32>
    %13 = tpu.matmul %3, %12, %cst_14 {dimension_numbers = #tpu.dot_dimension_numbers<[1], [0], [0], [1], [0, 0, 1, 1], [], []>} : vector<8x32xf32>, vector<32x32xf32>, vector<8x32xf32> -> vector<8x32xf32>
    %c0_15 = arith.constant 0 : index
    %c0_16 = arith.constant 0 : index
    %14 = vector.load %arg7[%c0_15, %c0_16] : memref<1x32xf32, #tpu.memory_space<vmem>>, vector<1x32xf32>
    %15 = vector.broadcast %14 : vector<1x32xf32> to vector<8x32xf32>
    %16 = arith.addf %13, %15 : vector<8x32xf32>
    %17 = vector.shape_cast %16 : vector<8x32xf32> to vector<1x8x32xf32>
    %c0_17 = arith.constant 0 : index
    %c0_18 = arith.constant 0 : index
    %18 = vector.load %arg8[%c0_17, %c0_18] : memref<32x32xf32, #tpu.memory_space<vmem>>, vector<32x32xf32>
    %cst_19 = arith.constant dense<0.000000e+00> : vector<8x32xf32>
    %19 = tpu.matmul %5, %18, %cst_19 {dimension_numbers = #tpu.dot_dimension_numbers<[1], [0], [0], [1], [0, 0, 1, 1], [], []>} : vector<8x32xf32>, vector<32x32xf32>, vector<8x32xf32> -> vector<8x32xf32>
    %c0_20 = arith.constant 0 : index
    %c0_21 = arith.constant 0 : index
    %20 = vector.load %arg9[%c0_20, %c0_21] : memref<1x32xf32, #tpu.memory_space<vmem>>, vector<1x32xf32>
    %21 = vector.broadcast %20 : vector<1x32xf32> to vector<8x32xf32>
    %22 = arith.addf %19, %21 : vector<8x32xf32>
    %23 = vector.shape_cast %22 : vector<8x32xf32> to vector<1x8x32xf32>
    %cst_22 = arith.constant dense<0.000000e+00> : vector<1x8x8xf32>
    %24 = tpu.matmul %11, %17, %cst_22 {dimension_numbers = #tpu.dot_dimension_numbers<[2], [2], [1], [1], [0, 0, 0, 1, 1, 1], [0], [0]>} : vector<1x8x32xf32>, vector<1x8x32xf32>, vector<1x8x8xf32> -> vector<1x8x8xf32>
    %cst_23 = arith.constant dense<0xFF800000> : vector<1x8xf32>
    %25 = vector.multi_reduction <maximumf>, %24, %cst_23 [2] : vector<1x8x8xf32> to vector<1x8xf32>
    %26 = vector.shape_cast %25 : vector<1x8xf32> to vector<1x8x1xf32>
    %27 = vector.broadcast %26 : vector<1x8x1xf32> to vector<1x8x8xf32>
    %28 = arith.subf %24, %27 : vector<1x8x8xf32>
    %29 = math.exp %28 : vector<1x8x8xf32>
    %cst_24 = arith.constant dense<0.000000e+00> : vector<1x8xf32>
    %30 = vector.multi_reduction <add>, %29, %cst_24 [2] : vector<1x8x8xf32> to vector<1x8xf32>
    %31 = vector.shape_cast %30 : vector<1x8xf32> to vector<1x8x1xf32>
    %32 = tpu.reciprocal %31 {approx = true} : vector<1x8x1xf32> -> vector<1x8x1xf32>
    %33 = vector.broadcast %32 : vector<1x8x1xf32> to vector<1x8x8xf32>
    %34 = arith.mulf %29, %33 : vector<1x8x8xf32>
    %cst_25 = arith.constant dense<0.000000e+00> : vector<1x8x32xf32>
    %35 = tpu.matmul %34, %23, %cst_25 {dimension_numbers = #tpu.dot_dimension_numbers<[2], [1], [1], [2], [0, 0, 0, 1, 1, 2], [0], [0]>} : vector<1x8x8xf32>, vector<1x8x32xf32>, vector<1x8x32xf32> -> vector<1x8x32xf32>
    %c0_26 = arith.constant 0 : index
    %c0_27 = arith.constant 0 : index
    %c0_28 = arith.constant 0 : index
    %36 = vector.load %arg10[%c0_26, %c0_27, %c0_28] : memref<1x8x32xf32, #tpu.memory_space<vmem>>, vector<1x8x32xf32>
    tpu.vector_store %arg10[%c0_26, %c0_27, %c0_28], %35 {strides = array<i32>} : memref<1x8x32xf32, #tpu.memory_space<vmem>>, vector<1x8x32xf32>,
    return
  }
  func.func @transform_0(%arg0: i32) -> (i32, i32, i32) {
    %c0_i32 = arith.constant 0 : i32
    %c0_i32_0 = arith.constant 0 : i32
    %c0_i32_1 = arith.constant 0 : i32
    return %arg0, %c0_i32, %c0_i32_0 : i32, i32, i32
  }
  func.func @transform_1(%arg0: i32) -> (i32, i32, i32) {
    %c0_i32 = arith.constant 0 : i32
    %c0_i32_0 = arith.constant 0 : i32
    %c0_i32_1 = arith.constant 0 : i32
    return %arg0, %c0_i32, %c0_i32_0 : i32, i32, i32
  }
  func.func @transform_2(%arg0: i32) -> (i32, i32, i32) {
    %c0_i32 = arith.constant 0 : i32
    %c0_i32_0 = arith.constant 0 : i32
    %c0_i32_1 = arith.constant 0 : i32
    return %arg0, %c0_i32, %c0_i32_0 : i32, i32, i32
  }
  func.func @transform_3(%arg0: i32) -> (i32, i32) {
    %c0_i32 = arith.constant 0 : i32
    %c0_i32_0 = arith.constant 0 : i32
    %c0_i32_1 = arith.constant 0 : i32
    return %c0_i32, %c0_i32_0 : i32, i32
  }
  func.func @transform_4(%arg0: i32) -> (i32, i32) {
    %c0_i32 = arith.constant 0 : i32
    %c0_i32_0 = arith.constant 0 : i32
    %c0_i32_1 = arith.constant 0 : i32
    return %c0_i32, %c0_i32_0 : i32, i32
  }
  func.func @transform_5(%arg0: i32) -> (i32, i32) {
    %c0_i32 = arith.constant 0 : i32
    %c0_i32_0 = arith.constant 0 : i32
    %c0_i32_1 = arith.constant 0 : i32
    return %c0_i32, %c0_i32_0 : i32, i32
  }
  func.func @transform_6(%arg0: i32) -> (i32, i32) {
    %c0_i32 = arith.constant 0 : i32
    %c0_i32_0 = arith.constant 0 : i32
    %c0_i32_1 = arith.constant 0 : i32
    return %c0_i32, %c0_i32_0 : i32, i32
  }
  func.func @transform_7(%arg0: i32) -> (i32, i32) {
    %c0_i32 = arith.constant 0 : i32
    %c0_i32_0 = arith.constant 0 : i32
    %c0_i32_1 = arith.constant 0 : i32
    return %c0_i32, %c0_i32_0 : i32, i32
  }
  func.func @transform_8(%arg0: i32) -> (i32, i32) {
    %c0_i32 = arith.constant 0 : i32
    %c0_i32_0 = arith.constant 0 : i32
    %c0_i32_1 = arith.constant 0 : i32
    return %c0_i32, %c0_i32_0 : i32, i32
  }
  func.func @transform_9(%arg0: i32) -> (i32, i32, i32) {
    %c0_i32 = arith.constant 0 : i32
    %c0_i32_0 = arith.constant 0 : i32
    %c0_i32_1 = arith.constant 0 : i32
    return %arg0, %c0_i32, %c0_i32_0 : i32, i32, i32
  }
}

module attributes {stable_mosaic.version = 11 : i64} {
  func.func @_cross_attention_kernel(%arg0: i32, %arg1: memref<1x8x32xf32, #tpu.memory_space<vmem>>, %arg2: memref<1x8x32xf32, #tpu.memory_space<vmem>>, %arg3: memref<1x8x32xf32, #tpu.memory_space<vmem>>, %arg4: memref<32x32xf32, #tpu.memory_space<vmem>>, %arg5: memref<1x32xf32, #tpu.memory_space<vmem>>, %arg6: memref<32x32xf32, #tpu.memory_space<vmem>>, %arg7: memref<1x32xf32, #tpu.memory_space<vmem>>, %arg8: memref<32x32xf32, #tpu.memory_space<vmem>>, %arg9: memref<1x32xf32, #tpu.memory_space<vmem>>, %arg10: memref<1x8x32xf32, #tpu.memory_space<vmem>>) attributes {dimension_semantics = [#tpu.dimension_semantics<parallel>], iteration_bounds = array<i64: 2>, scalar_prefetch = 0 : i64, scratch_operands = 0 : i64, tpu.core_type = #tpu.core_type<tc>, window_params = [{transform_indices = @transform_0, window_bounds = array<i64: 1, 8, 32>}, {transform_indices = @transform_1, window_bounds = array<i64: 1, 8, 32>}, {transform_indices = @transform_2, window_bounds = array<i64: 1, 8, 32>}, {pipeline_mode = #tpu.pipeline_mode<synchronous>, transform_indices = @transform_3, window_bounds = array<i64: 32, 32>}, {pipeline_mode = #tpu.pipeline_mode<synchronous>, transform_indices = @transform_4, window_bounds = array<i64: 1, 32>}, {pipeline_mode = #tpu.pipeline_mode<synchronous>, transform_indices = @transform_5, window_bounds = array<i64: 32, 32>}, {pipeline_mode = #tpu.pipeline_mode<synchronous>, transform_indices = @transform_6, window_bounds = array<i64: 1, 32>}, {pipeline_mode = #tpu.pipeline_mode<synchronous>, transform_indices = @transform_7, window_bounds = array<i64: 32, 32>}, {pipeline_mode = #tpu.pipeline_mode<synchronous>, transform_indices = @transform_8, window_bounds = array<i64: 1, 32>}, {transform_indices = @transform_9, window_bounds = array<i64: 1, 8, 32>}]} {
    %c0 = arith.constant 0 : index
    %c0_0 = arith.constant 0 : index
    %c0_1 = arith.constant 0 : index
    %0 = vector.load %arg1[%c0, %c0_0, %c0_1] : memref<1x8x32xf32, #tpu.memory_space<vmem>>, vector<1x8x32xf32>
    %1 = vector.shape_cast %0 : vector<1x8x32xf32> to vector<8x32xf32>
    %c0_2 = arith.constant 0 : index
    %c0_3 = arith.constant 0 : index
    %c0_4 = arith.constant 0 : index
    %2 = vector.load %arg2[%c0_2, %c0_3, %c0_4] : memref<1x8x32xf32, #tpu.memory_space<vmem>>, vector<1x8x32xf32>
    %3 = vector.shape_cast %2 : vector<1x8x32xf32> to vector<8x32xf32>
    %c0_5 = arith.constant 0 : index
    %c0_6 = arith.constant 0 : index
    %c0_7 = arith.constant 0 : index
    %4 = vector.load %arg3[%c0_5, %c0_6, %c0_7] : memref<1x8x32xf32, #tpu.memory_space<vmem>>, vector<1x8x32xf32>
    %5 = vector.shape_cast %4 : vector<1x8x32xf32> to vector<8x32xf32>
    %c0_8 = arith.constant 0 : index
    %c0_9 = arith.constant 0 : index
    %6 = vector.load %arg4[%c0_8, %c0_9] : memref<32x32xf32, #tpu.memory_space<vmem>>, vector<32x32xf32>
    %cst = arith.constant dense<0.000000e+00> : vector<8x32xf32>
    %7 = tpu.matmul %1, %6, %cst {dimension_numbers = #tpu.dot_dimension_numbers<[1], [0], [0], [1], [0, 0, 1, 1], [], []>} : vector<8x32xf32>, vector<32x32xf32>, vector<8x32xf32> -> vector<8x32xf32>
    %c0_10 = arith.constant 0 : index
    %c0_11 = arith.constant 0 : index
    %8 = vector.load %arg5[%c0_10, %c0_11] : memref<1x32xf32, #tpu.memory_space<vmem>>, vector<1x32xf32>
    %9 = vector.broadcast %8 : vector<1x32xf32> to vector<8x32xf32>
    %10 = arith.addf %7, %9 : vector<8x32xf32>
    %11 = vector.shape_cast %10 : vector<8x32xf32> to vector<1x8x32xf32>
    %c0_12 = arith.constant 0 : index
    %c0_13 = arith.constant 0 : index
    %12 = vector.load %arg6[%c0_12, %c0_13] : memref<32x32xf32, #tpu.memory_space<vmem>>, vector<32x32xf32>
    %cst_14 = arith.constant dense<0.000000e+00> : vector<8x32xf32>
    %13 = tpu.matmul %3, %12, %cst_14 {dimension_numbers = #tpu.dot_dimension_numbers<[1], [0], [0], [1], [0, 0, 1, 1], [], []>} : vector<8x32xf32>, vector<32x32xf32>, vector<8x32xf32> -> vector<8x32xf32>
    %c0_15 = arith.constant 0 : index
    %c0_16 = arith.constant 0 : index
    %14 = vector.load %arg7[%c0_15, %c0_16] : memref<1x32xf32, #tpu.memory_space<vmem>>, vector<1x32xf32>
    %15 = vector.broadcast %14 : vector<1x32xf32> to vector<8x32xf32>
    %16 = arith.addf %13, %15 : vector<8x32xf32>
    %17 = vector.shape_cast %16 : vector<8x32xf32> to vector<1x8x32xf32>
    %c0_17 = arith.constant 0 : index
    %c0_18 = arith.constant 0 : index
    %18 = vector.load %arg8[%c0_17, %c0_18] : memref<32x32xf32, #tpu.memory_space<vmem>>, vector<32x32xf32>
    %cst_19 = arith.constant dense<0.000000e+00> : vector<8x32xf32>
    %19 = tpu.matmul %5, %18, %cst_19 {dimension_numbers = #tpu.dot_dimension_numbers<[1], [0], [0], [1], [0, 0, 1, 1], [], []>} : vector<8x32xf32>, vector<32x32xf32>, vector<8x32xf32> -> vector<8x32xf32>
    %c0_20 = arith.constant 0 : index
    %c0_21 = arith.constant 0 : index
    %20 = vector.load %arg9[%c0_20, %c0_21] : memref<1x32xf32, #tpu.memory_space<vmem>>, vector<1x32xf32>
    %21 = vector.broadcast %20 : vector<1x32xf32> to vector<8x32xf32>
    %22 = arith.addf %19, %21 : vector<8x32xf32>
    %23 = vector.shape_cast %22 : vector<8x32xf32> to vector<1x8x32xf32>
    %cst_22 = arith.constant dense<0.000000e+00> : vector<1x8x8xf32>
    %24 = tpu.matmul %11, %17, %cst_22 {dimension_numbers = #tpu.dot_dimension_numbers<[2], [2], [1], [1], [0, 0, 0, 1, 1, 1], [0], [0]>} : vector<1x8x32xf32>, vector<1x8x32xf32>, vector<1x8x8xf32> -> vector<1x8x8xf32>
    %cst_23 = arith.constant dense<0xFF800000> : vector<1x8xf32>
    %25 = vector.multi_reduction <maximumf>, %24, %cst_23 [2] : vector<1x8x8xf32> to vector<1x8xf32>
    %26 = vector.shape_cast %25 : vector<1x8xf32> to vector<1x8x1xf32>
    %27 = vector.broadcast %26 : vector<1x8x1xf32> to vector<1x8x8xf32>
    %28 = arith.subf %24, %27 : vector<1x8x8xf32>
    %29 = math.exp %28 : vector<1x8x8xf32>
    %cst_24 = arith.constant dense<0.000000e+00> : vector<1x8xf32>
    %30 = vector.multi_reduction <add>, %29, %cst_24 [2] : vector<1x8x8xf32> to vector<1x8xf32>
    %31 = vector.shape_cast %30 : vector<1x8xf32> to vector<1x8x1xf32>
    %32 = tpu.reciprocal %31 {approx = true} : vector<1x8x1xf32> -> vector<1x8x1xf32>
    %33 = vector.broadcast %32 : vector<1x8x1xf32> to vector<1x8x8xf32>
    %34 = arith.mulf %29, %33 : vector<1x8x8xf32>
    %cst_25 = arith.constant dense<0.000000e+00> : vector<1x8x32xf32>
    %35 = tpu.matmul %34, %23, %cst_25 {dimension_numbers = #tpu.dot_dimension_numbers<[2], [1], [1], [2], [0, 0, 0, 1, 1, 2], [0], [0]>} : vector<1x8x8xf32>, vector<1x8x32xf32>, vector<1x8x32xf32> -> vector<1x8x32xf32>
    %c0_26 = arith.constant 0 : index
    %c0_27 = arith.constant 0 : index
    %c0_28 = arith.constant 0 : index
    %36 = vector.load %arg10[%c0_26, %c0_27, %c0_28] : memref<1x8x32xf32, #tpu.memory_space<vmem>>, vector<1x8x32xf32>
    tpu.vector_store %arg10[%c0_26, %c0_27, %c0_28], %35 {strides = array<i32>} : memref<1x8x32xf32, #tpu.memory_space<vmem>>, vector<1x8x32xf32>,
    return
  }
  func.func @transform_0(%arg0: i32) -> (i32, i32, i32) {
    %c0_i32 = arith.constant 0 : i32
    %c0_i32_0 = arith.constant 0 : i32
    %c0_i32_1 = arith.constant 0 : i32
    return %arg0, %c0_i32, %c0_i32_0 : i32, i32, i32
  }
  func.func @transform_1(%arg0: i32) -> (i32, i32, i32) {
    %c0_i32 = arith.constant 0 : i32
    %c0_i32_0 = arith.constant 0 : i32
    %c0_i32_1 = arith.constant 0 : i32
    return %arg0, %c0_i32, %c0_i32_0 : i32, i32, i32
  }
  func.func @transform_2(%arg0: i32) -> (i32, i32, i32) {
    %c0_i32 = arith.constant 0 : i32
    %c0_i32_0 = arith.constant 0 : i32
    %c0_i32_1 = arith.constant 0 : i32
    return %arg0, %c0_i32, %c0_i32_0 : i32, i32, i32
  }
  func.func @transform_3(%arg0: i32) -> (i32, i32) {
    %c0_i32 = arith.constant 0 : i32
    %c0_i32_0 = arith.constant 0 : i32
    %c0_i32_1 = arith.constant 0 : i32
    return %c0_i32, %c0_i32_0 : i32, i32
  }
  func.func @transform_4(%arg0: i32) -> (i32, i32) {
    %c0_i32 = arith.constant 0 : i32
    %c0_i32_0 = arith.constant 0 : i32
    %c0_i32_1 = arith.constant 0 : i32
    return %c0_i32, %c0_i32_0 : i32, i32
  }
  func.func @transform_5(%arg0: i32) -> (i32, i32) {
    %c0_i32 = arith.constant 0 : i32
    %c0_i32_0 = arith.constant 0 : i32
    %c0_i32_1 = arith.constant 0 : i32
    return %c0_i32, %c0_i32_0 : i32, i32
  }
  func.func @transform_6(%arg0: i32) -> (i32, i32) {
    %c0_i32 = arith.constant 0 : i32
    %c0_i32_0 = arith.constant 0 : i32
    %c0_i32_1 = arith.constant 0 : i32
    return %c0_i32, %c0_i32_0 : i32, i32
  }
  func.func @transform_7(%arg0: i32) -> (i32, i32) {
    %c0_i32 = arith.constant 0 : i32
    %c0_i32_0 = arith.constant 0 : i32
    %c0_i32_1 = arith.constant 0 : i32
    return %c0_i32, %c0_i32_0 : i32, i32
  }
  func.func @transform_8(%arg0: i32) -> (i32, i32) {
    %c0_i32 = arith.constant 0 : i32
    %c0_i32_0 = arith.constant 0 : i32
    %c0_i32_1 = arith.constant 0 : i32
    return %c0_i32, %c0_i32_0 : i32, i32
  }
  func.func @transform_9(%arg0: i32) -> (i32, i32, i32) {
    %c0_i32 = arith.constant 0 : i32
    %c0_i32_0 = arith.constant 0 : i32
    %c0_i32_1 = arith.constant 0 : i32
    return %arg0, %c0_i32, %c0_i32_0 : i32, i32, i32
  }
}

</mosaic_0001>

<bundles_post_ra>
// kernel: tpu_custom_call.1
= control target key start
LH: loop header
LB: loop body
LE: loop exit
PB: predicated region body
PF: predicated region fallthrough
CT: control target
= control target key end

     0   :  { %s1835_s0 = inlined_call_operand.hbm [shape: f32[2,8,32], index: 0, kind: input, shape index: {}]   ;;  %s1836_s1 = inlined_call_operand.hbm [shape: f32[2,8,32], index: 1, kind: input, shape index: {}]   ;;  %s1837_s2 = inlined_call_operand.hbm [shape: f32[2,8,32], index: 2, kind: input, shape index: {}]   ;;  %s1838_s3 = inlined_call_operand.hbm [shape: f32[32,32], index: 3, kind: input, shape index: {}]   ;;  %s1839_s4 = inlined_call_operand.vmem [shape: f32[1,32], index: 4, kind: input, shape index: {}]   ;;  %s1840_s5 = inlined_call_operand.hbm [shape: f32[32,32], index: 5, kind: input, shape index: {}]   ;;  %s1841_s6 = inlined_call_operand.vmem [shape: f32[1,32], index: 6, kind: input, shape index: {}]   ;;  %s1842_s7 = inlined_call_operand.hbm [shape: f32[32,32], index: 7, kind: input, shape index: {}]   ;;  %s1843_s8 = inlined_call_operand.vmem [shape: f32[1,32], index: 8, kind: input, shape index: {}]   ;;  %s1844_s9 = inlined_call_operand.hbm [shape: f32[2,8,32], index: 9, kind: output, shape index: {}]  }
   0x1   :  { %1865 = sst [smem:[#allocation25_spill]] %s1836_s1 }
   0x2   :  { %1866 = sst [smem:[#allocation26_spill]] %s1838_s3 }
   0x3   :  { %1867 = sst [smem:[#allocation27_spill]] %s1844_s9 }
   0x4   :  { %14 = vsyncpa [#allocation3], 0 }
   0x5   :  { %16 = vsyncpa [#allocation3 + $0x1], 0 }
   0x6   :  { %17 = vsyncpa [#allocation6], 0 }
   0x7   :  { %19 = vsyncpa [#allocation6 + $0x1], 0 }
   0x8   :  { %20 = vsyncpa [#allocation9], 0 }
   0x9   :  { %21 = vsyncpa [#allocation12], 0 }
   0xa   :  { %22 = vsyncpa [#allocation4], 0 }
   0xb   :  { %24 = vsyncpa [#allocation4 + $0x1], 0  ;;  %s1528_s30 = smov 0   ;;  %s1530_s10 = smov 0  }
   0xc   :  { %s1532_s11 = smov 0   ;;  %s1534_s12 = smov 0  }
   0xd LB: > { %1868 = sst [smem:[#allocation19_spill]] %s1453_s30  ;;  %s1549_s13 = sadd.s32 4294967295, %s1465_s12   ;;  %s1465_s12 = sphi %s1534_s12, %s1903_s12   ;;  %s1461_s11 = sphi %s1532_s11, %s1907_s11   ;;  %s1457_s10 = sphi %s1530_s10, %s1906_s10   ;;  %s1453_s30 = sphi %s1528_s30, %s1905_s30  }
   0xe   : > { %1869 = sst [smem:[#allocation20_spill]] %s1465_s12  ;;  %s1037_s14 = sadd.s32 4294967294, %s1465_s12  }
   0xf   : > { %p50_p0 = scmp.ne.s32.totalorder %s1457_s10, %s1453_s30  ;;  %p1854_p1 = scmp.eq.s32.totalorder %s1549_s13, 0 }
  0x10   : > { %p252_p2 = scmp.eq.s32.totalorder %s1549_s13, 1  ;;  %p258_p3 = scmp.eq.s32.totalorder %s1037_s14, 1 }
  0x11   : > { %p1558_p4 = por %p1854_p1, %p50_p0  ;;  %p1038_p5 = scmp.ge.s32.totalorder %s1465_s12, 1 }
  0x12   : > { %p1563_p6 = por %p258_p3, %p50_p0  ;;  %p265_p7 = scmp.lt.s32.totalorder %s1465_s12, 3 }
  0x13   : > { %s1870_s15 = scalar_select %p1558_p4, 1, 0 }
  0x14   : > { %s1871_s16 = scalar_select %p1563_p6, 1, 0 }
  0x15   : > { %p1568_p8 = pnand %p1038_p5, %p265_p7  ;;  %s1467_s18 = smov [#allocation8]  }
  0x16   : > { %1872 = sst [smem:[#allocation21_spill]] %s1871_s16  ;;  %s277_s19 = sshll.u32 %s1467_s18, 4  ;;  %s278_s19 = int_to_ptr.vmem [resolvable:$true] %s277_s19 }
  0x17   : > { %s1873_s17 = scalar_select %p1568_p8, 1, 0 }
  0x18   : > { %p1152_p9 = pneg %p1568_p8  ;;  %s1582_s21 = sadd.s32 1, %s1465_s12  }
  0x19   : > { %1875 = sst [smem:[#allocation22_spill]] %s1582_s21  ;;  %s37_s22 = sadd.s32 1, %s1461_s11 }
  0x1a   : > { %p1577_p11 = pnand %p1152_p9, %p1854_p1  ;;  %s34_s23 = ssub.s32 %s1465_s12, %s1582_s21 }
  0x1b   : > { %s1238_s24 = scalar_lea.vmem %s278_s19, 512  ;;  %p1246_p5 = scmp.lt.s32.totalorder %s278_s19, %s278_s19 }
  0x1c   : > { %s1874_s20 = scalar_select %p1577_p11, 1, 0 }
  0x1d   : > { %p1855_p12 = pneg %p1577_p11  ;;  %p1239_p13 = scmp.ne.s32.totalorder %s278_s19, %s1238_s24 }
  0x1e   : > { %p1247_p7 = scmp.lt.s32.totalorder %s1238_s24, %s1238_s24 }
  0x1f   : > { %p1241_p0 = pnand %p1239_p13, %p1855_p12 }
  0x20   : > { %p1248_p9 = por %p1247_p7, %p1246_p5 }
  0x21   : > { %p1242_p3 = pneg %p1241_p0 }
  0x23   : > { %p1249_p10 = pnand %p1248_p9, %p1242_p3 }
  0x25   : > { %1252 = shalt.err (!%p1249_p10)
}
  0x26   : > { %s1847_s25 = smov 128   ;;  %s1849_s26 = smov 8  }
  0x27   : > { %s1876_s3 = sld [smem:[#allocation26_spill]]  ;;  %p35_p10 = scmp.eq.s32.totalorder %s34_s23, 0 }
  0x28   : > { %p44_p13 = scmp.ne.s32.totalorder %s1461_s11, %s1457_s10  ;;  %p45_p0 = scmp.eq.s32.totalorder %s1465_s12, 0 }
  0x29   : > { %p1179_p3 = scmp.lt.s32.totalorder %s1465_s12, 2  ;;  %s1851_s18 = sand.u32 1, %s1461_s11  }
  0x2a   : > { %s1605_s29 = scalar_select %p35_p10, %s1461_s11, %s37_s22  }
  0x2b   : > { %p46_p5 = por %p45_p0, %p44_p13  ;;  %p1609_p7 = por %p252_p2, %p44_p13 }
  0x2c   : > { %1877 = sst [smem:[#allocation23_spill]] %s1605_s29  ;;  %s1615_s24 = sshll.u32 %s1465_s12, 7 }
  0x2d   : > { %1155 = dma.hbm_to_vmem [thread:$0]  (!%p1577_p11), %s1876_s3, 512, %s278_s19, [#allocation9], %s1847_s25, %s1847_s25, %s1849_s26  }
  0x2e   : > { %s1878_s14 = scalar_select %p1609_p7, 1, 0 }
  0x2f   : > { %s1619_s21 = sshll.u32 %s1851_s18, 3  ;;  %p1621_p9 = pnand %p1179_p3, %p46_p5 }
  0x30   : > { %1879 = sst [smem:[#allocation24_spill]] %s1878_s14  ;;  %s344_s22 = sand.u32 1, %s1465_s12  }
  0x31   : > { %s1881_s1 = sld [smem:[#allocation25_spill]]  ;;  %s348_s25 = scalar_lea.vmem [#allocation5], %s1619_s21 }
  0x32   : > { %s355_s26 = sshll.u32 %s348_s25, 4  ;;  %s1633_s18 = scalar_lea.sflag [#allocation6], %s344_s22  ;;  %s356_s26 = int_to_ptr.vmem [resolvable:$true] %s355_s26 }
  0x33   : > { %p1639_p10 = pneg %p1621_p9 }
  0x37   : > { %s1630_s28 = scalar_lea.hbm %s1881_s1, %s1615_s24  ;;  %s1258_s12 = scalar_lea.hbm %s1881_s1, 256 }
  0x38   : > { %s1253_s3 = scalar_lea.hbm %s1630_s28, 128  ;;  %p1259_p3 = scmp.lt.s32.totalorder %s1630_s28, %s1881_s1 }
  0x39   : > { %p1254_p2 = scmp.ne.s32.totalorder %s1630_s28, %s1253_s3  ;;  %p1260_p5 = scmp.lt.s32.totalorder %s1258_s12, %s1253_s3 }
  0x3b   : > { %p1256_p13 = pnand %p1639_p10, %p1254_p2  ;;  %p1261_p1 = por %p1260_p5, %p1259_p3 }
  0x3d   : > { %p1257_p0 = pneg %p1256_p13 }
  0x3f   : > { %p1262_p12 = pnand %p1261_p1, %p1257_p0 }
  0x41   : > { %1265 = shalt.err (!%p1262_p12)
}
  0x42   : > { %s1266_s22 = scalar_lea.vmem %s356_s26, 128  ;;  %s1470_s30 = smov [#allocation5]  }
  0x43   : > { %p1267_p6 = scmp.ne.s32.totalorder %s356_s26, %s1266_s22  ;;  %s1271_s9 = sshll.u32 %s1470_s30, 4  ;;  %s1272_s9 = int_to_ptr.vmem [resolvable:$false] %s1271_s9 }
  0x44   : > { %s1273_s14 = scalar_lea.vmem %s1272_s9, 256  ;;  %p1274_p2 = scmp.lt.s32.totalorder %s356_s26, %s1272_s9 }
  0x45   : > { %p1269_p7 = pnand %p1267_p6, %p1639_p10  ;;  %p1275_p13 = scmp.lt.s32.totalorder %s1273_s14, %s1266_s22 }
  0x47   : > { %p1270_p4 = pneg %p1269_p7  ;;  %p1276_p8 = por %p1275_p13, %p1274_p2 }
  0x49   : > { %p1277_p11 = pnand %p1276_p8, %p1270_p4 }
  0x4b   : > { %1280 = shalt.err (!%p1277_p11)
}
  0x4c   : > { %1168 = dma.hbm_to_vmem [thread:$0]  (!%p1621_p9), %s1630_s28, 128, %s356_s26, %s1633_s18  }
  0x4d   : > { %s1471_s3 = smov [#allocation10]   ;;  %s1472_s16 = smov [#allocation11]  }
  0x4e   : > { %s293_s12 = sshll.u32 %s1471_s3, 4  ;;  %s309_s23 = sshll.u32 %s1472_s16, 4  ;;  %s294_s12 = int_to_ptr.vmem [resolvable:$true] %s293_s12  ;;  %s310_s23 = int_to_ptr.vmem [resolvable:$true] %s309_s23 }
  0x4f   : > { %s1292_s27 = scalar_lea.vmem %s294_s12, 512  ;;  %p1883_p6 = scmp.ne.s32.totalorder %s1874_s20, 0 }
  0x50   : > { %p1293_p1 = scmp.ne.s32.totalorder %s294_s12, %s1292_s27  ;;  %p1300_p3 = scmp.lt.s32.totalorder %s294_s12, %s294_s12 }
  0x51   : > { %p1884_p12 = pneg %p1883_p6  ;;  %p1301_p4 = scmp.lt.s32.totalorder %s1292_s27, %s1292_s27 }
  0x53   : > { %p1295_p7 = pnand %p1293_p1, %p1884_p12  ;;  %p1302_p8 = por %p1301_p4, %p1300_p3 }
  0x55   : > { %p1296_p0 = pneg %p1295_p7 }
  0x57   : > { %p1303_p11 = pnand %p1302_p8, %p1296_p0 }
  0x59   : > { %1306 = shalt.err (!%p1303_p11)
}
  0x5a   : > { %s1885_s9 = smov 8   ;;  %s1886_s30 = smov 128  }
  0x5b   : > { %1158 = dma.hbm_to_vmem [thread:$0]  (!%p1883_p6), %s1840_s5, 512, %s294_s12, [#allocation9], %s1886_s30, %s1886_s30, %s1885_s9  }
  0x5c   : > { %s1318_s28 = scalar_lea.vmem %s310_s23, 512  ;;  %p1887_p2 = pmov %p1884_p12 }
  0x5d   : > { %p1319_p5 = scmp.ne.s32.totalorder %s310_s23, %s1318_s28  ;;  %p1326_p12 = scmp.lt.s32.totalorder %s310_s23, %s310_s23 }
  0x5e   : > { %p1327_p7 = scmp.lt.s32.totalorder %s1318_s28, %s1318_s28 }
  0x5f   : > { %p1321_p13 = pnand %p1319_p5, %p1887_p2 }
  0x60   : > { %p1328_p0 = por %p1327_p7, %p1326_p12 }
  0x61   : > { %p1322_p1 = pneg %p1321_p13 }
  0x63   : > { %p1329_p3 = pnand %p1328_p0, %p1322_p1 }
  0x65   : > { %1332 = shalt.err (!%p1329_p3)
}
  0x66   : > { %1161 = dma.hbm_to_vmem [thread:$0]  (!%p1883_p6), %s1842_s7, 512, %s310_s23, [#allocation12], %s1886_s30, %s1886_s30, %s1885_s9  }
  0x67   : > { %s1684_s16 = scalar_lea.hbm %s1835_s0, %s1615_s24  ;;  %s330_s20 = scalar_lea.vmem [#allocation2], %s1619_s21 }
  0x68   : > { %s337_s27 = sshll.u32 %s330_s20, 4  ;;  %s1691_s28 = scalar_lea.hbm %s1837_s2, %s1615_s24  ;;  %s338_s27 = int_to_ptr.vmem [resolvable:$true] %s337_s27 }
  0x69   : > { %s1888_s25 = sand.u32 1, %s1461_s11   ;;  %s1333_s1 = scalar_lea.hbm %s1684_s16, 128 }
  0x6a   : > { %s327_s22 = scalar_lea.sflag [#allocation3], %s1888_s25  ;;  %p1334_p6 = scmp.ne.s32.totalorder %s1684_s16, %s1333_s1 }
  0x6b   : > { %s1338_s30 = scalar_lea.hbm %s1835_s0, 256  ;;  %p1339_p11 = scmp.lt.s32.totalorder %s1684_s16, %s1835_s0 }
  0x6c   : > { %p1336_p4 = pnand %p1334_p6, %p1639_p10  ;;  %p1340_p5 = scmp.lt.s32.totalorder %s1338_s30, %s1333_s1 }
  0x6e   : > { %p1337_p8 = pneg %p1336_p4  ;;  %p1341_p2 = por %p1340_p5, %p1339_p11 }
  0x70   : > { %p1342_p13 = pnand %p1341_p2, %p1337_p8 }
  0x72   : > { %1345 = shalt.err (!%p1342_p13)
}
  0x73   : > { %s1346_s24 = scalar_lea.vmem %s338_s27, 128  ;;  %s1473_s20 = smov [#allocation2]  }
  0x74   : > { %p1347_p1 = scmp.ne.s32.totalorder %s338_s27, %s1346_s24  ;;  %s1351_s26 = sshll.u32 %s1473_s20, 4  ;;  %s1352_s26 = int_to_ptr.vmem [resolvable:$false] %s1351_s26 }
  0x75   : > { %s1353_s14 = scalar_lea.vmem %s1352_s26, 256  ;;  %p1354_p0 = scmp.lt.s32.totalorder %s338_s27, %s1352_s26 }
  0x76   : > { %p1349_p12 = pnand %p1347_p1, %p1639_p10  ;;  %p1355_p3 = scmp.lt.s32.totalorder %s1353_s14, %s1346_s24 }
  0x78   : > { %p1350_p7 = pneg %p1349_p12  ;;  %p1356_p6 = por %p1355_p3, %p1354_p0 }
  0x7a   : > { %p1357_p4 = pnand %p1356_p6, %p1350_p7 }
  0x7c   : > { %1360 = shalt.err (!%p1357_p4)
}
  0x7d   : > { %1165 = dma.hbm_to_vmem [thread:$0]  (!%p1621_p9), %s1684_s16, 128, %s338_s27, %s327_s22  }
  0x7e   : > { %s366_s1 = scalar_lea.vmem [#allocation7], %s1619_s21  ;;  %s1361_s23 = scalar_lea.hbm %s1691_s28, 128 }
  0x7f   : > { %s373_s25 = sshll.u32 %s366_s1, 4  ;;  %p1362_p8 = scmp.ne.s32.totalorder %s1691_s28, %s1361_s23  ;;  %s374_s25 = int_to_ptr.vmem [resolvable:$true] %s373_s25 }
  0x80   : > { %s1366_s3 = scalar_lea.hbm %s1837_s2, 256  ;;  %p1367_p2 = scmp.lt.s32.totalorder %s1691_s28, %s1837_s2 }
  0x81   : > { %p1364_p11 = pnand %p1362_p8, %p1639_p10  ;;  %p1368_p13 = scmp.lt.s32.totalorder %s1366_s3, %s1361_s23 }
  0x83   : > { %p1365_p5 = pneg %p1364_p11  ;;  %p1369_p1 = por %p1368_p13, %p1367_p2 }
  0x85   : > { %p1370_p12 = pnand %p1369_p1, %p1365_p5 }
  0x87   : > { %1373 = shalt.err (!%p1370_p12)
}
  0x88   : > { %s1374_s21 = scalar_lea.vmem %s374_s25, 128  ;;  %s1474_s16 = smov [#allocation7]  }
  0x89   : > { %p1375_p7 = scmp.ne.s32.totalorder %s374_s25, %s1374_s21  ;;  %s1379_s27 = sshll.u32 %s1474_s16, 4  ;;  %s1380_s27 = int_to_ptr.vmem [resolvable:$false] %s1379_s27 }
  0x8a   : > { %s1381_s22 = scalar_lea.vmem %s1380_s27, 256  ;;  %p1382_p6 = scmp.lt.s32.totalorder %s374_s25, %s1380_s27 }
  0x8b   : > { %p1377_p0 = pnand %p1375_p7, %p1639_p10  ;;  %p1383_p4 = scmp.lt.s32.totalorder %s1381_s22, %s1374_s21 }
  0x8d   : > { %p1378_p3 = pneg %p1377_p0  ;;  %p1384_p8 = por %p1383_p4, %p1382_p6 }
  0x8f   : > { %p1385_p11 = pnand %p1384_p8, %p1378_p3 }
  0x91   : > { %1388 = shalt.err (!%p1385_p11)
}
  0x92   : > { %1171 = dma.hbm_to_vmem [thread:$0]  (!%p1621_p9), %s1691_s28, 128, %s374_s25, %s1633_s18  }
  0x93   : > { %p1889_p5 = scmp.ne.s32.totalorder %s1873_s17, 0 }
  0x94   : > { %s1732_s29 = sand.u32 (!%p1889_p5), 1, %s1457_s10   ;;  %p1890_p10 = scmp.ne.s32.totalorder (!%p1889_p5), %s1870_s15, 0 }
  0x95   : > { %382 = sbr.rel (%p1889_p5) target bundleno = 1085 (0x43d), region = 56  ;;  %s1735_s20 = sshll.u32 (!%p1889_p5), %s1732_s29, 3 }
  0x96   : > { %s385_s26 = scalar_lea.sflag (!%p1889_p5), [#allocation3], %s1732_s29  ;;  %s388_s14 = scalar_lea.vmem (!%p1889_p5), [#allocation2], %s1735_s20 }
  0x9a   : > { %1432 = dma.done.wait (%p1890_p10), %s385_s26, 128  }
  0x9b   : > { %1434 = vsyncadd (%p1890_p10), %s385_s26, 4294967168  ;;  %s393_s17 = sand.u32 1, %s1549_s13   ;;  %s397_s19 = scalar_lea.vmem [#allocation5], %s1735_s20 }
  0x9c   : > { %s394_s18 = scalar_lea.sflag [#allocation6], %s393_s17 }
  0x9d   : > { %1436 = dma.done.wait (%p1890_p10), %s394_s18, 256  }
  0x9e   : > { %1438 = vsyncadd (%p1890_p10), %s394_s18, 4294967040  ;;  %s406_s28 = scalar_lea.vmem [#allocation7], %s1735_s20  ;;  %p1891_p9 = scmp.eq.s32.totalorder %s1549_s13, 0 }
  0xa0   : > { %1440 = dma.done.wait (%p1891_p9), [#allocation9], 1024   ;;  %p1892_p2 = pmov %p1891_p9 }
  0xa2   : > { %1442 = vsyncadd (%p1892_p2), [#allocation9], 4294966272  ;;  %p1893_p13 = pmov %p1892_p2 }
  0xa3   : > { %p1894_p1 = pmov %p1892_p2 }
  0xa4   : > { %1444 = dma.done.wait (%p1893_p13), [#allocation12], 512  }
  0xa5   : > { %1446 = vsyncadd (%p1894_p1), [#allocation12], 4294966784  ;;  %v1475_v0 = vmov 0.0   ;;  %vm1476_vm0 = vmmov 0   ;;  %v554_v1 = vld [vmem:[#allocation10 + $0x18] sm:$0xff]  ;;  %v553_v3 = vld [vmem:[#allocation10 + $0x10] sm:$0xff] }
  0xa6   : > { %1100 = vmatprep.subr.mxu1 %v1475_v0  ;;  %1089 = vmatprep.subr.mxu0 %v1475_v0  ;;  %v469_v2 = vld [vmem:[#allocation8 + $0x18] sm:$0xff]  ;;  %v468_v4 = vld [vmem:[#allocation8 + $0x10] sm:$0xff]  ;;  %v552_v5 = vld [vmem:[#allocation10 + $0x8] sm:$0xff]  ;;  %vm477_vm1 = vcmask 261120   ;;  %vm795_vm2 = vcmask 64512   ;;  %s1895_s3 = sld [smem:[#allocation24_spill]] }
  0xa7   : > { %1108 = vmatprep.mubr.msk.f32.mxu1 %vm1476_vm0, %v1475_v0  ;;  %1097 = vmatprep.mubr.msk.f32.mxu0 %vm1476_vm0, %v1475_v0  ;;  %v467_v6 = vld [vmem:[#allocation8 + $0x8] sm:$0xff]  ;;  %v551_v7 = vld [vmem:[#allocation10] sm:$0xff]  ;;  %v463_v10 = vld [vmem:[%s388_s14] sm:$0xff]  ;;  %s1067_s12 = sshll.u32 %s1549_s13, 7  ;;  %s462_s24 = scalar_lea.vmem [#allocation13], %s1735_s20 }
  0xa8   : > { %1101 = vmatpush3.msra.mxu1 %v554_v1  ;;  %1090 = vmatpush3.msra.mxu0 %v469_v2  ;;  %v466_v8 = vld [vmem:[#allocation8] sm:$0xff]  ;;  %v1059_v11 = vld [vmem:[%s1841_s6] ss:$0 sm:$0xff]  ;;  %v638_v19 = vld [vmem:[#allocation11 + $0x18] sm:$0xff]  ;;  %s895_s21 = sshll.u32 %s462_s24, 4  ;;  %s1896_s22 = sld [smem:[#allocation27_spill]]  ;;  %s1793_s21 = int_to_ptr.vmem [resolvable:$true] %s895_s21 }
  0xa9   : > { %1102 = vmatprep.subr.mxu1 %v1475_v0  ;;  %1091 = vmatprep.subr.mxu0 %v1475_v0  ;;  %v464_v9 = vld [vmem:[%s397_s19] sm:$0xff]  ;;  %v1057_v12 = vld [vmem:[%s1839_s4] ss:$0 sm:$0xff]  ;;  %s882_s14 = scalar_lea.sflag [#allocation4], %s1732_s29  ;;  %s1389_s17 = scalar_lea.vmem %s1793_s21, 128 }
  0xaa   : > { %1103 = vmatpush3.msra.mxu1 %v553_v3  ;;  %1092 = vmatpush3.msra.mxu0 %v468_v4  ;;  %v637_v20 = vld [vmem:[#allocation11 + $0x10] sm:$0xff]  ;;  %v636_v21 = vld [vmem:[#allocation11 + $0x8] sm:$0xff]  ;;  %v635_v22 = vld [vmem:[#allocation11] sm:$0xff]  ;;  %p1390_p12 = scmp.ne.s32.totalorder %s1793_s21, %s1389_s17  ;;  %s1477_s13 = smov [#allocation13]  }
  0xab   : > { %1104 = vmatprep.subr.mxu1 %v1475_v0  ;;  %1093 = vmatprep.subr.mxu0 %v1475_v0  ;;  %v465_v23 = vld [vmem:[%s406_s28] sm:$0xff]  ;;  %s1393_s20 = sshll.u32 %s1477_s13, 4  ;;  %s1394_s20 = int_to_ptr.vmem [resolvable:$false] %s1393_s20 }
  0xac   : > { %1105 = vmatpush3.msra.mxu1 %v552_v5  ;;  %1094 = vmatpush3.msra.mxu0 %v467_v6  ;;  %v1061_v32 = vld [vmem:[%s1843_s8] ss:$0 sm:$0xff]  ;;  %p1897_p7 = scmp.ne.s32.totalorder %s1895_s3, 0  ;;  %s1395_s18 = scalar_lea.vmem %s1394_s20, 256 }
  0xad   : > { %1106 = vmatprep.subr.mxu1 %v1475_v0  ;;  %1095 = vmatprep.subr.mxu0 %v1475_v0  ;;  %p1396_p6 = scmp.lt.s32.totalorder %s1793_s21, %s1394_s20  ;;  %p1397_p4 = scmp.lt.s32.totalorder %s1395_s18, %s1389_s17 }
  0xae   : > { %1107 = vmatpush3.msra.mxu1 %v551_v7  ;;  %1096 = vmatpush3.msra.mxu0 %v466_v8  ;;  %s1791_s26 = scalar_lea.hbm %s1896_s22, %s1067_s12  ;;  %p1391_p0 = pnand %p1390_p12, %p1897_p7 }
  0xaf   : > { %1109 = vmatmul.mubr.msk.f32.vlgmr.msra.gmra.mxu1 %vm477_vm1, %v464_v9  ;;  %1098 = vmatmul.mubr.msk.f32.vlgmr.msra.gmra.mxu0 %vm477_vm1, %v463_v10  ;;  %p1398_p8 = por %p1397_p4, %p1396_p6 }
  0xb0   : > { %1122 = vmatprep.subr.mxu1 %v1475_v0  ;;  %1124 = vmatprep.mubr.msk.f32.mxu1 %vm1476_vm0, %v1475_v0  ;;  %p1392_p3 = pneg %p1391_p0 }
  0xb1   : > { %1111 = vmatprep.subr.mxu0 %v1475_v0  ;;  %1119 = vmatprep.mubr.msk.f32.mxu0 %vm1476_vm0, %v1475_v0 }
  0xb2   : > { %1112 = vmatpush3.msra.mxu0 %v638_v19  ;;  %p1399_p11 = pnand %p1398_p8, %p1392_p3 }
  0xb3   : > { %1113 = vmatprep.subr.mxu0 %v1475_v0 }
  0xb4   : > { %1114 = vmatpush3.msra.mxu0 %v637_v20 }
  0xb5   : > { %1115 = vmatprep.subr.mxu0 %v1475_v0 }
  0xb6   : > { %1116 = vmatpush3.msra.mxu0 %v636_v21 }
  0xb7   : > { %1117 = vmatprep.subr.mxu0 %v1475_v0 }
  0xb8   : > { %1118 = vmatpush3.msra.mxu0 %v635_v22 }
  0xb9   : > { %1120 = vmatmul.mubr.msk.f32.vlgmr.msra.gmra.mxu0 %vm477_vm1, %v465_v23 }
 0x16f   : > { %v631_v13 = vpop.f32.mrf.mxu1  ;;  %v547_v14 = vpop.f32.mrf.mxu0 }
 0x170   : > { %v632_v15 = vadd.f32 %v1059_v11, %v631_v13  ;;  %v548_v16 = vadd.f32 %v1057_v12, %v547_v14 }
 0x171   : > { %v1110_v17 = vpop.f32.mrf.mxu1  ;;  %v1099_v18 = vpop.f32.mrf.mxu0 }
 0x172   : > { %1123 = vmatpush3.xpose.msk.msra.mxu1 %vm477_vm1, %v632_v15 }
 0x173   : > { %1127 = vmatprep.subr.mxu1 %v1475_v0 }
 0x175   : > { %1125 = vmatmul.mubr.msk.f32.vlgmr.msra.gmra.mxu1 %vm477_vm1, %v548_v16 }
 0x176   : > { %1129 = vmatprep.mubr.msk.f32.mxu1 %vm1476_vm0, %v1475_v0 }
 0x179   : > { %v715_v33 = vpop.f32.mrf.mxu0 }
 0x17a   : > { %v716_v34 = vadd.f32 %v1061_v32, %v715_v33 }
 0x17b   : > { %v1121_v35 = vpop.f32.mrf.mxu0 }
 0x17c   : > { %1128 = vmatpush3.msra.mxu1 %v716_v34 }
 0x235   : > { %v791_v24 = vpop.f32.mrf.mxu1 }
 0x236   : > { %v796_v25 = vsel %vm795_vm2, %v791_v24, -inf }
 0x237   : > { %797 = vmax.xlane.f32.xlu0 %v796_v25  ;;  %v1126_v26 = vpop.f32.mrf.mxu1 }
 0x2c0   : > { %v798_v27 = vpop.xlane.xlu0 %797 }
 0x2c1   : > { %v799_v28 = vsub.f32 %v791_v24, %v798_v27 }
 0x2c3   : > { %v800_v29 = vmul.f32 1.442695, %v799_v28 }
 0x2c5   : > { %1223 = vpow2.f32 %v800_v29 }
 0x2d2   : > { %v1224_v30 = vpop.eup %1223 }
 0x2d3   : > { %v802_v31 = vsel %vm795_vm2, %v1224_v30, 0.0 }
 0x2d4   : > { %803 = vadd.xlane.f32.xlu0 %v802_v31 }
 0x35d   : > { %v804_v36 = vpop.xlane.xlu0 %803 }
 0x35e   : > { %1225 = vrcp.f32 %v804_v36 }
 0x36b   : > { %v1226_v37 = vpop.eup %1225 }
 0x36c   : > { %v806_v38 = vmul.f32 %v1226_v37, %v1224_v30 }
 0x36e   : > { %1130 = vmatmul.mubr.msk.f32.vlgmr.msra.gmra.mxu1 %vm795_vm2, %v806_v38 }
 0x42e   : > { %v876_v39 = vpop.f32.mrf.mxu1 }
 0x42f   : > { %880 = vst.msk [vmem:[%s462_s24] sm:$0xff] %vm477_vm1, %v876_v39 }
 0x430   : > { %v1131_v40 = vpop.f32.mrf.mxu1 }
 0x431   : > { %1402 = shalt.err (!%p1399_p11)
}
 0x432   : > { %s1403_s19 = scalar_lea.hbm %s1791_s26, 128  ;;  %s1407_s15 = scalar_lea.hbm %s1896_s22, 256 }
 0x433   : > { %p1404_p5 = scmp.ne.s32.totalorder %s1791_s26, %s1403_s19  ;;  %p1408_p2 = scmp.lt.s32.totalorder %s1791_s26, %s1896_s22 }
 0x434   : > { %p1409_p13 = scmp.lt.s32.totalorder %s1407_s15, %s1403_s19 }
 0x435   : > { %p1405_p10 = pnand %p1404_p5, %p1897_p7 }
 0x436   : > { %p1410_p1 = por %p1409_p13, %p1408_p2 }
 0x437   : > { %p1406_p9 = pneg %p1405_p10 }
 0x439   : > { %p1411_p12 = pnand %p1410_p1, %p1406_p9 }
 0x43b   : > { %1414 = shalt.err (!%p1411_p12)
}
 0x43c   : > { %1150 = dma.vmem_to_hbm [thread:$0]  (%p1897_p7), %s1793_s21, 128, %s1791_s26, %s882_s14  }
 0x43d PF: > { %s1898_s23 = sld [smem:[#allocation19_spill]] }
 0x43e   : > { %s1899_s9 = sld [smem:[#allocation21_spill]] }
 0x43f   : > { %s1900_s30 = sld [smem:[#allocation20_spill]] }
 0x443   : > { %s907_s12 = sand.u32 1, %s1898_s23  }
 0x444   : > { %p1901_p0 = scmp.ne.s32.totalorder %s1899_s9, 0  ;;  %s908_s24 = scalar_lea.sflag [#allocation4], %s907_s12 }
 0x445   : > { %p1902_p3 = scmp.ge.s32.totalorder %s1900_s30, 2 }
 0x447   : > { %p1173_p6 = pnand %p1902_p3, %p1901_p0 }
 0x449   : > { %p1174_p4 = pneg %p1173_p6 }
 0x44b   : > { %1448 = dma.done.wait (%p1174_p4), %s908_s24, 128  }
 0x44c   : > { %1450 = vsyncadd (%p1174_p4), %s908_s24, 4294967168  ;;  %s1903_s12 = sld [smem:[#allocation22_spill]]  ;;  %s1905_s30 = smov %s1457_s10 }
 0x44d   : > { %s1904_s16 = sld [smem:[#allocation23_spill]]  ;;  %s1906_s10 = smov %s1461_s11 }
 0x452   : > { %p27_p8 = scmp.ge.s32.totalorder %s1903_s12, 4  }
 0x453   : > { %s1907_s11 = smov %s1904_s16 }
 0x454   :  { %29 = sbr.rel (!%p27_p8) target bundleno = 13 (0xd), region = 137 }
 0x459   :  { %913 = vsyncpa [#allocation3], 1 }
 0x45a   :  { %915 = vsyncpa [#allocation3 + $0x1], 1 }
 0x45b   :  { %916 = vsyncpa [#allocation6], 1 }
 0x45c   :  { %918 = vsyncpa [#allocation6 + $0x1], 1 }
 0x45d   :  { %919 = vsyncpa [#allocation9], 1 }
 0x45e   :  { %920 = vsyncpa [#allocation12], 1 }
 0x45f   :  { %921 = vsyncpa [#allocation4], 1 }
 0x460   :  { %923 = vsyncpa [#allocation4 + $0x1], 1 }

// kernel: tpu_custom_call.1
= control target key start
LH: loop header
LB: loop body
LE: loop exit
PB: predicated region body
PF: predicated region fallthrough
CT: control target
= control target key end

     0   :  { %s1835_s0 = inlined_call_operand.hbm [shape: f32[2,8,32], index: 0, kind: input, shape index: {}]   ;;  %s1836_s1 = inlined_call_operand.hbm [shape: f32[2,8,32], index: 1, kind: input, shape index: {}]   ;;  %s1837_s2 = inlined_call_operand.hbm [shape: f32[2,8,32], index: 2, kind: input, shape index: {}]   ;;  %s1838_s3 = inlined_call_operand.hbm [shape: f32[32,32], index: 3, kind: input, shape index: {}]   ;;  %s1839_s4 = inlined_call_operand.vmem [shape: f32[1,32], index: 4, kind: input, shape index: {}]   ;;  %s1840_s5 = inlined_call_operand.hbm [shape: f32[32,32], index: 5, kind: input, shape index: {}]   ;;  %s1841_s6 = inlined_call_operand.vmem [shape: f32[1,32], index: 6, kind: input, shape index: {}]   ;;  %s1842_s7 = inlined_call_operand.hbm [shape: f32[32,32], index: 7, kind: input, shape index: {}]   ;;  %s1843_s8 = inlined_call_operand.vmem [shape: f32[1,32], index: 8, kind: input, shape index: {}]   ;;  %s1844_s9 = inlined_call_operand.hbm [shape: f32[2,8,32], index: 9, kind: output, shape index: {}]  }
   0x1   :  { %1865 = sst [smem:[#allocation25_spill]] %s1836_s1 }
   0x2   :  { %1866 = sst [smem:[#allocation26_spill]] %s1838_s3 }
   0x3   :  { %1867 = sst [smem:[#allocation27_spill]] %s1844_s9 }
   0x4   :  { %14 = vsyncpa [#allocation3], 0 }
   0x5   :  { %16 = vsyncpa [#allocation3 + $0x1], 0 }
   0x6   :  { %17 = vsyncpa [#allocation6], 0 }
   0x7   :  { %19 = vsyncpa [#allocation6 + $0x1], 0 }
   0x8   :  { %20 = vsyncpa [#allocation9], 0 }
   0x9   :  { %21 = vsyncpa [#allocation12], 0 }
   0xa   :  { %22 = vsyncpa [#allocation4], 0 }
   0xb   :  { %24 = vsyncpa [#allocation4 + $0x1], 0  ;;  %s1528_s30 = smov 0   ;;  %s1530_s10 = smov 0  }
   0xc   :  { %s1532_s11 = smov 0   ;;  %s1534_s12 = smov 0  }
   0xd LB: > { %1868 = sst [smem:[#allocation19_spill]] %s1453_s30  ;;  %s1549_s13 = sadd.s32 4294967295, %s1465_s12   ;;  %s1465_s12 = sphi %s1534_s12, %s1903_s12   ;;  %s1461_s11 = sphi %s1532_s11, %s1907_s11   ;;  %s1457_s10 = sphi %s1530_s10, %s1906_s10   ;;  %s1453_s30 = sphi %s1528_s30, %s1905_s30  }
   0xe   : > { %1869 = sst [smem:[#allocation20_spill]] %s1465_s12  ;;  %s1037_s14 = sadd.s32 4294967294, %s1465_s12  }
   0xf   : > { %p50_p0 = scmp.ne.s32.totalorder %s1457_s10, %s1453_s30  ;;  %p1854_p1 = scmp.eq.s32.totalorder %s1549_s13, 0 }
  0x10   : > { %p252_p2 = scmp.eq.s32.totalorder %s1549_s13, 1  ;;  %p258_p3 = scmp.eq.s32.totalorder %s1037_s14, 1 }
  0x11   : > { %p1558_p4 = por %p1854_p1, %p50_p0  ;;  %p1038_p5 = scmp.ge.s32.totalorder %s1465_s12, 1 }
  0x12   : > { %p1563_p6 = por %p258_p3, %p50_p0  ;;  %p265_p7 = scmp.lt.s32.totalorder %s1465_s12, 3 }
  0x13   : > { %s1870_s15 = scalar_select %p1558_p4, 1, 0 }
  0x14   : > { %s1871_s16 = scalar_select %p1563_p6, 1, 0 }
  0x15   : > { %p1568_p8 = pnand %p1038_p5, %p265_p7  ;;  %s1467_s18 = smov [#allocation8]  }
  0x16   : > { %1872 = sst [smem:[#allocation21_spill]] %s1871_s16  ;;  %s277_s19 = sshll.u32 %s1467_s18, 4  ;;  %s278_s19 = int_to_ptr.vmem [resolvable:$true] %s277_s19 }
  0x17   : > { %s1873_s17 = scalar_select %p1568_p8, 1, 0 }
  0x18   : > { %p1152_p9 = pneg %p1568_p8  ;;  %s1582_s21 = sadd.s32 1, %s1465_s12  }
  0x19   : > { %1875 = sst [smem:[#allocation22_spill]] %s1582_s21  ;;  %s37_s22 = sadd.s32 1, %s1461_s11 }
  0x1a   : > { %p1577_p11 = pnand %p1152_p9, %p1854_p1  ;;  %s34_s23 = ssub.s32 %s1465_s12, %s1582_s21 }
  0x1b   : > { %s1238_s24 = scalar_lea.vmem %s278_s19, 512  ;;  %p1246_p5 = scmp.lt.s32.totalorder %s278_s19, %s278_s19 }
  0x1c   : > { %s1874_s20 = scalar_select %p1577_p11, 1, 0 }
  0x1d   : > { %p1855_p12 = pneg %p1577_p11  ;;  %p1239_p13 = scmp.ne.s32.totalorder %s278_s19, %s1238_s24 }
  0x1e   : > { %p1247_p7 = scmp.lt.s32.totalorder %s1238_s24, %s1238_s24 }
  0x1f   : > { %p1241_p0 = pnand %p1239_p13, %p1855_p12 }
  0x20   : > { %p1248_p9 = por %p1247_p7, %p1246_p5 }
  0x21   : > { %p1242_p3 = pneg %p1241_p0 }
  0x23   : > { %p1249_p10 = pnand %p1248_p9, %p1242_p3 }
  0x25   : > { %1252 = shalt.err (!%p1249_p10)
}
  0x26   : > { %s1847_s25 = smov 128   ;;  %s1849_s26 = smov 8  }
  0x27   : > { %s1876_s3 = sld [smem:[#allocation26_spill]]  ;;  %p35_p10 = scmp.eq.s32.totalorder %s34_s23, 0 }
  0x28   : > { %p44_p13 = scmp.ne.s32.totalorder %s1461_s11, %s1457_s10  ;;  %p45_p0 = scmp.eq.s32.totalorder %s1465_s12, 0 }
  0x29   : > { %p1179_p3 = scmp.lt.s32.totalorder %s1465_s12, 2  ;;  %s1851_s18 = sand.u32 1, %s1461_s11  }
  0x2a   : > { %s1605_s29 = scalar_select %p35_p10, %s1461_s11, %s37_s22  }
  0x2b   : > { %p46_p5 = por %p45_p0, %p44_p13  ;;  %p1609_p7 = por %p252_p2, %p44_p13 }
  0x2c   : > { %1877 = sst [smem:[#allocation23_spill]] %s1605_s29  ;;  %s1615_s24 = sshll.u32 %s1465_s12, 7 }
  0x2d   : > { %1155 = dma.hbm_to_vmem [thread:$0]  (!%p1577_p11), %s1876_s3, 512, %s278_s19, [#allocation9], %s1847_s25, %s1847_s25, %s1849_s26  }
  0x2e   : > { %s1878_s14 = scalar_select %p1609_p7, 1, 0 }
  0x2f   : > { %s1619_s21 = sshll.u32 %s1851_s18, 3  ;;  %p1621_p9 = pnand %p1179_p3, %p46_p5 }
  0x30   : > { %1879 = sst [smem:[#allocation24_spill]] %s1878_s14  ;;  %s344_s22 = sand.u32 1, %s1465_s12  }
  0x31   : > { %s1881_s1 = sld [smem:[#allocation25_spill]]  ;;  %s348_s25 = scalar_lea.vmem [#allocation5], %s1619_s21 }
  0x32   : > { %s355_s26 = sshll.u32 %s348_s25, 4  ;;  %s1633_s18 = scalar_lea.sflag [#allocation6], %s344_s22  ;;  %s356_s26 = int_to_ptr.vmem [resolvable:$true] %s355_s26 }
  0x33   : > { %p1639_p10 = pneg %p1621_p9 }
  0x37   : > { %s1630_s28 = scalar_lea.hbm %s1881_s1, %s1615_s24  ;;  %s1258_s12 = scalar_lea.hbm %s1881_s1, 256 }
  0x38   : > { %s1253_s3 = scalar_lea.hbm %s1630_s28, 128  ;;  %p1259_p3 = scmp.lt.s32.totalorder %s1630_s28, %s1881_s1 }
  0x39   : > { %p1254_p2 = scmp.ne.s32.totalorder %s1630_s28, %s1253_s3  ;;  %p1260_p5 = scmp.lt.s32.totalorder %s1258_s12, %s1253_s3 }
  0x3b   : > { %p1256_p13 = pnand %p1639_p10, %p1254_p2  ;;  %p1261_p1 = por %p1260_p5, %p1259_p3 }
  0x3d   : > { %p1257_p0 = pneg %p1256_p13 }
  0x3f   : > { %p1262_p12 = pnand %p1261_p1, %p1257_p0 }
  0x41   : > { %1265 = shalt.err (!%p1262_p12)
}
  0x42   : > { %s1266_s22 = scalar_lea.vmem %s356_s26, 128  ;;  %s1470_s30 = smov [#allocation5]  }
  0x43   : > { %p1267_p6 = scmp.ne.s32.totalorder %s356_s26, %s1266_s22  ;;  %s1271_s9 = sshll.u32 %s1470_s30, 4  ;;  %s1272_s9 = int_to_ptr.vmem [resolvable:$false] %s1271_s9 }
  0x44   : > { %s1273_s14 = scalar_lea.vmem %s1272_s9, 256  ;;  %p1274_p2 = scmp.lt.s32.totalorder %s356_s26, %s1272_s9 }
  0x45   : > { %p1269_p7 = pnand %p1267_p6, %p1639_p10  ;;  %p1275_p13 = scmp.lt.s32.totalorder %s1273_s14, %s1266_s22 }
  0x47   : > { %p1270_p4 = pneg %p1269_p7  ;;  %p1276_p8 = por %p1275_p13, %p1274_p2 }
  0x49   : > { %p1277_p11 = pnand %p1276_p8, %p1270_p4 }
  0x4b   : > { %1280 = shalt.err (!%p1277_p11)
}
  0x4c   : > { %1168 = dma.hbm_to_vmem [thread:$0]  (!%p1621_p9), %s1630_s28, 128, %s356_s26, %s1633_s18  }
  0x4d   : > { %s1471_s3 = smov [#allocation10]   ;;  %s1472_s16 = smov [#allocation11]  }
  0x4e   : > { %s293_s12 = sshll.u32 %s1471_s3, 4  ;;  %s309_s23 = sshll.u32 %s1472_s16, 4  ;;  %s294_s12 = int_to_ptr.vmem [resolvable:$true] %s293_s12  ;;  %s310_s23 = int_to_ptr.vmem [resolvable:$true] %s309_s23 }
  0x4f   : > { %s1292_s27 = scalar_lea.vmem %s294_s12, 512  ;;  %p1883_p6 = scmp.ne.s32.totalorder %s1874_s20, 0 }
  0x50   : > { %p1293_p1 = scmp.ne.s32.totalorder %s294_s12, %s1292_s27  ;;  %p1300_p3 = scmp.lt.s32.totalorder %s294_s12, %s294_s12 }
  0x51   : > { %p1884_p12 = pneg %p1883_p6  ;;  %p1301_p4 = scmp.lt.s32.totalorder %s1292_s27, %s1292_s27 }
  0x53   : > { %p1295_p7 = pnand %p1293_p1, %p1884_p12  ;;  %p1302_p8 = por %p1301_p4, %p1300_p3 }
  0x55   : > { %p1296_p0 = pneg %p1295_p7 }
  0x57   : > { %p1303_p11 = pnand %p1302_p8, %p1296_p0 }
  0x59   : > { %1306 = shalt.err (!%p1303_p11)
}
  0x5a   : > { %s1885_s9 = smov 8   ;;  %s1886_s30 = smov 128  }
  0x5b   : > { %1158 = dma.hbm_to_vmem [thread:$0]  (!%p1883_p6), %s1840_s5, 512, %s294_s12, [#allocation9], %s1886_s30, %s1886_s30, %s1885_s9  }
  0x5c   : > { %s1318_s28 = scalar_lea.vmem %s310_s23, 512  ;;  %p1887_p2 = pmov %p1884_p12 }
  0x5d   : > { %p1319_p5 = scmp.ne.s32.totalorder %s310_s23, %s1318_s28  ;;  %p1326_p12 = scmp.lt.s32.totalorder %s310_s23, %s310_s23 }
  0x5e   : > { %p1327_p7 = scmp.lt.s32.totalorder %s1318_s28, %s1318_s28 }
  0x5f   : > { %p1321_p13 = pnand %p1319_p5, %p1887_p2 }
  0x60   : > { %p1328_p0 = por %p1327_p7, %p1326_p12 }
  0x61   : > { %p1322_p1 = pneg %p1321_p13 }
  0x63   : > { %p1329_p3 = pnand %p1328_p0, %p1322_p1 }
  0x65   : > { %1332 = shalt.err (!%p1329_p3)
}
  0x66   : > { %1161 = dma.hbm_to_vmem [thread:$0]  (!%p1883_p6), %s1842_s7, 512, %s310_s23, [#allocation12], %s1886_s30, %s1886_s30, %s1885_s9  }
  0x67   : > { %s1684_s16 = scalar_lea.hbm %s1835_s0, %s1615_s24  ;;  %s330_s20 = scalar_lea.vmem [#allocation2], %s1619_s21 }
  0x68   : > { %s337_s27 = sshll.u32 %s330_s20, 4  ;;  %s1691_s28 = scalar_lea.hbm %s1837_s2, %s1615_s24  ;;  %s338_s27 = int_to_ptr.vmem [resolvable:$true] %s337_s27 }
  0x69   : > { %s1888_s25 = sand.u32 1, %s1461_s11   ;;  %s1333_s1 = scalar_lea.hbm %s1684_s16, 128 }
  0x6a   : > { %s327_s22 = scalar_lea.sflag [#allocation3], %s1888_s25  ;;  %p1334_p6 = scmp.ne.s32.totalorder %s1684_s16, %s1333_s1 }
  0x6b   : > { %s1338_s30 = scalar_lea.hbm %s1835_s0, 256  ;;  %p1339_p11 = scmp.lt.s32.totalorder %s1684_s16, %s1835_s0 }
  0x6c   : > { %p1336_p4 = pnand %p1334_p6, %p1639_p10  ;;  %p1340_p5 = scmp.lt.s32.totalorder %s1338_s30, %s1333_s1 }
  0x6e   : > { %p1337_p8 = pneg %p1336_p4  ;;  %p1341_p2 = por %p1340_p5, %p1339_p11 }
  0x70   : > { %p1342_p13 = pnand %p1341_p2, %p1337_p8 }
  0x72   : > { %1345 = shalt.err (!%p1342_p13)
}
  0x73   : > { %s1346_s24 = scalar_lea.vmem %s338_s27, 128  ;;  %s1473_s20 = smov [#allocation2]  }
  0x74   : > { %p1347_p1 = scmp.ne.s32.totalorder %s338_s27, %s1346_s24  ;;  %s1351_s26 = sshll.u32 %s1473_s20, 4  ;;  %s1352_s26 = int_to_ptr.vmem [resolvable:$false] %s1351_s26 }
  0x75   : > { %s1353_s14 = scalar_lea.vmem %s1352_s26, 256  ;;  %p1354_p0 = scmp.lt.s32.totalorder %s338_s27, %s1352_s26 }
  0x76   : > { %p1349_p12 = pnand %p1347_p1, %p1639_p10  ;;  %p1355_p3 = scmp.lt.s32.totalorder %s1353_s14, %s1346_s24 }
  0x78   : > { %p1350_p7 = pneg %p1349_p12  ;;  %p1356_p6 = por %p1355_p3, %p1354_p0 }
  0x7a   : > { %p1357_p4 = pnand %p1356_p6, %p1350_p7 }
  0x7c   : > { %1360 = shalt.err (!%p1357_p4)
}
  0x7d   : > { %1165 = dma.hbm_to_vmem [thread:$0]  (!%p1621_p9), %s1684_s16, 128, %s338_s27, %s327_s22  }
  0x7e   : > { %s366_s1 = scalar_lea.vmem [#allocation7], %s1619_s21  ;;  %s1361_s23 = scalar_lea.hbm %s1691_s28, 128 }
  0x7f   : > { %s373_s25 = sshll.u32 %s366_s1, 4  ;;  %p1362_p8 = scmp.ne.s32.totalorder %s1691_s28, %s1361_s23  ;;  %s374_s25 = int_to_ptr.vmem [resolvable:$true] %s373_s25 }
  0x80   : > { %s1366_s3 = scalar_lea.hbm %s1837_s2, 256  ;;  %p1367_p2 = scmp.lt.s32.totalorder %s1691_s28, %s1837_s2 }
  0x81   : > { %p1364_p11 = pnand %p1362_p8, %p1639_p10  ;;  %p1368_p13 = scmp.lt.s32.totalorder %s1366_s3, %s1361_s23 }
  0x83   : > { %p1365_p5 = pneg %p1364_p11  ;;  %p1369_p1 = por %p1368_p13, %p1367_p2 }
  0x85   : > { %p1370_p12 = pnand %p1369_p1, %p1365_p5 }
  0x87   : > { %1373 = shalt.err (!%p1370_p12)
}
  0x88   : > { %s1374_s21 = scalar_lea.vmem %s374_s25, 128  ;;  %s1474_s16 = smov [#allocation7]  }
  0x89   : > { %p1375_p7 = scmp.ne.s32.totalorder %s374_s25, %s1374_s21  ;;  %s1379_s27 = sshll.u32 %s1474_s16, 4  ;;  %s1380_s27 = int_to_ptr.vmem [resolvable:$false] %s1379_s27 }
  0x8a   : > { %s1381_s22 = scalar_lea.vmem %s1380_s27, 256  ;;  %p1382_p6 = scmp.lt.s32.totalorder %s374_s25, %s1380_s27 }
  0x8b   : > { %p1377_p0 = pnand %p1375_p7, %p1639_p10  ;;  %p1383_p4 = scmp.lt.s32.totalorder %s1381_s22, %s1374_s21 }
  0x8d   : > { %p1378_p3 = pneg %p1377_p0  ;;  %p1384_p8 = por %p1383_p4, %p1382_p6 }
  0x8f   : > { %p1385_p11 = pnand %p1384_p8, %p1378_p3 }
  0x91   : > { %1388 = shalt.err (!%p1385_p11)
}
  0x92   : > { %1171 = dma.hbm_to_vmem [thread:$0]  (!%p1621_p9), %s1691_s28, 128, %s374_s25, %s1633_s18  }
  0x93   : > { %p1889_p5 = scmp.ne.s32.totalorder %s1873_s17, 0 }
  0x94   : > { %s1732_s29 = sand.u32 (!%p1889_p5), 1, %s1457_s10   ;;  %p1890_p10 = scmp.ne.s32.totalorder (!%p1889_p5), %s1870_s15, 0 }
  0x95   : > { %382 = sbr.rel (%p1889_p5) target bundleno = 1085 (0x43d), region = 56  ;;  %s1735_s20 = sshll.u32 (!%p1889_p5), %s1732_s29, 3 }
  0x96   : > { %s385_s26 = scalar_lea.sflag (!%p1889_p5), [#allocation3], %s1732_s29  ;;  %s388_s14 = scalar_lea.vmem (!%p1889_p5), [#allocation2], %s1735_s20 }
  0x9a   : > { %1432 = dma.done.wait (%p1890_p10), %s385_s26, 128  }
  0x9b   : > { %1434 = vsyncadd (%p1890_p10), %s385_s26, 4294967168  ;;  %s393_s17 = sand.u32 1, %s1549_s13   ;;  %s397_s19 = scalar_lea.vmem [#allocation5], %s1735_s20 }
  0x9c   : > { %s394_s18 = scalar_lea.sflag [#allocation6], %s393_s17 }
  0x9d   : > { %1436 = dma.done.wait (%p1890_p10), %s394_s18, 256  }
  0x9e   : > { %1438 = vsyncadd (%p1890_p10), %s394_s18, 4294967040  ;;  %s406_s28 = scalar_lea.vmem [#allocation7], %s1735_s20  ;;  %p1891_p9 = scmp.eq.s32.totalorder %s1549_s13, 0 }
  0xa0   : > { %1440 = dma.done.wait (%p1891_p9), [#allocation9], 1024   ;;  %p1892_p2 = pmov %p1891_p9 }
  0xa2   : > { %1442 = vsyncadd (%p1892_p2), [#allocation9], 4294966272  ;;  %p1893_p13 = pmov %p1892_p2 }
  0xa3   : > { %p1894_p1 = pmov %p1892_p2 }
  0xa4   : > { %1444 = dma.done.wait (%p1893_p13), [#allocation12], 512  }
  0xa5   : > { %1446 = vsyncadd (%p1894_p1), [#allocation12], 4294966784  ;;  %v1475_v0 = vmov 0.0   ;;  %vm1476_vm0 = vmmov 0   ;;  %v554_v1 = vld [vmem:[#allocation10 + $0x18] sm:$0xff]  ;;  %v553_v3 = vld [vmem:[#allocation10 + $0x10] sm:$0xff] }
  0xa6   : > { %1100 = vmatprep.subr.mxu1 %v1475_v0  ;;  %1089 = vmatprep.subr.mxu0 %v1475_v0  ;;  %v469_v2 = vld [vmem:[#allocation8 + $0x18] sm:$0xff]  ;;  %v468_v4 = vld [vmem:[#allocation8 + $0x10] sm:$0xff]  ;;  %v552_v5 = vld [vmem:[#allocation10 + $0x8] sm:$0xff]  ;;  %vm477_vm1 = vcmask 261120   ;;  %vm795_vm2 = vcmask 64512   ;;  %s1895_s3 = sld [smem:[#allocation24_spill]] }
  0xa7   : > { %1108 = vmatprep.mubr.msk.f32.mxu1 %vm1476_vm0, %v1475_v0  ;;  %1097 = vmatprep.mubr.msk.f32.mxu0 %vm1476_vm0, %v1475_v0  ;;  %v467_v6 = vld [vmem:[#allocation8 + $0x8] sm:$0xff]  ;;  %v551_v7 = vld [vmem:[#allocation10] sm:$0xff]  ;;  %v463_v10 = vld [vmem:[%s388_s14] sm:$0xff]  ;;  %s1067_s12 = sshll.u32 %s1549_s13, 7  ;;  %s462_s24 = scalar_lea.vmem [#allocation13], %s1735_s20 }
  0xa8   : > { %1101 = vmatpush3.msra.mxu1 %v554_v1  ;;  %1090 = vmatpush3.msra.mxu0 %v469_v2  ;;  %v466_v8 = vld [vmem:[#allocation8] sm:$0xff]  ;;  %v1059_v11 = vld [vmem:[%s1841_s6] ss:$0 sm:$0xff]  ;;  %v638_v19 = vld [vmem:[#allocation11 + $0x18] sm:$0xff]  ;;  %s895_s21 = sshll.u32 %s462_s24, 4  ;;  %s1896_s22 = sld [smem:[#allocation27_spill]]  ;;  %s1793_s21 = int_to_ptr.vmem [resolvable:$true] %s895_s21 }
  0xa9   : > { %1102 = vmatprep.subr.mxu1 %v1475_v0  ;;  %1091 = vmatprep.subr.mxu0 %v1475_v0  ;;  %v464_v9 = vld [vmem:[%s397_s19] sm:$0xff]  ;;  %v1057_v12 = vld [vmem:[%s1839_s4] ss:$0 sm:$0xff]  ;;  %s882_s14 = scalar_lea.sflag [#allocation4], %s1732_s29  ;;  %s1389_s17 = scalar_lea.vmem %s1793_s21, 128 }
  0xaa   : > { %1103 = vmatpush3.msra.mxu1 %v553_v3  ;;  %1092 = vmatpush3.msra.mxu0 %v468_v4  ;;  %v637_v20 = vld [vmem:[#allocation11 + $0x10] sm:$0xff]  ;;  %v636_v21 = vld [vmem:[#allocation11 + $0x8] sm:$0xff]  ;;  %v635_v22 = vld [vmem:[#allocation11] sm:$0xff]  ;;  %p1390_p12 = scmp.ne.s32.totalorder %s1793_s21, %s1389_s17  ;;  %s1477_s13 = smov [#allocation13]  }
  0xab   : > { %1104 = vmatprep.subr.mxu1 %v1475_v0  ;;  %1093 = vmatprep.subr.mxu0 %v1475_v0  ;;  %v465_v23 = vld [vmem:[%s406_s28] sm:$0xff]  ;;  %s1393_s20 = sshll.u32 %s1477_s13, 4  ;;  %s1394_s20 = int_to_ptr.vmem [resolvable:$false] %s1393_s20 }
  0xac   : > { %1105 = vmatpush3.msra.mxu1 %v552_v5  ;;  %1094 = vmatpush3.msra.mxu0 %v467_v6  ;;  %v1061_v32 = vld [vmem:[%s1843_s8] ss:$0 sm:$0xff]  ;;  %p1897_p7 = scmp.ne.s32.totalorder %s1895_s3, 0  ;;  %s1395_s18 = scalar_lea.vmem %s1394_s20, 256 }
  0xad   : > { %1106 = vmatprep.subr.mxu1 %v1475_v0  ;;  %1095 = vmatprep.subr.mxu0 %v1475_v0  ;;  %p1396_p6 = scmp.lt.s32.totalorder %s1793_s21, %s1394_s20  ;;  %p1397_p4 = scmp.lt.s32.totalorder %s1395_s18, %s1389_s17 }
  0xae   : > { %1107 = vmatpush3.msra.mxu1 %v551_v7  ;;  %1096 = vmatpush3.msra.mxu0 %v466_v8  ;;  %s1791_s26 = scalar_lea.hbm %s1896_s22, %s1067_s12  ;;  %p1391_p0 = pnand %p1390_p12, %p1897_p7 }
  0xaf   : > { %1109 = vmatmul.mubr.msk.f32.vlgmr.msra.gmra.mxu1 %vm477_vm1, %v464_v9  ;;  %1098 = vmatmul.mubr.msk.f32.vlgmr.msra.gmra.mxu0 %vm477_vm1, %v463_v10  ;;  %p1398_p8 = por %p1397_p4, %p1396_p6 }
  0xb0   : > { %1122 = vmatprep.subr.mxu1 %v1475_v0  ;;  %1124 = vmatprep.mubr.msk.f32.mxu1 %vm1476_vm0, %v1475_v0  ;;  %p1392_p3 = pneg %p1391_p0 }
  0xb1   : > { %1111 = vmatprep.subr.mxu0 %v1475_v0  ;;  %1119 = vmatprep.mubr.msk.f32.mxu0 %vm1476_vm0, %v1475_v0 }
  0xb2   : > { %1112 = vmatpush3.msra.mxu0 %v638_v19  ;;  %p1399_p11 = pnand %p1398_p8, %p1392_p3 }
  0xb3   : > { %1113 = vmatprep.subr.mxu0 %v1475_v0 }
  0xb4   : > { %1114 = vmatpush3.msra.mxu0 %v637_v20 }
  0xb5   : > { %1115 = vmatprep.subr.mxu0 %v1475_v0 }
  0xb6   : > { %1116 = vmatpush3.msra.mxu0 %v636_v21 }
  0xb7   : > { %1117 = vmatprep.subr.mxu0 %v1475_v0 }
  0xb8   : > { %1118 = vmatpush3.msra.mxu0 %v635_v22 }
  0xb9   : > { %1120 = vmatmul.mubr.msk.f32.vlgmr.msra.gmra.mxu0 %vm477_vm1, %v465_v23 }
 0x16f   : > { %v631_v13 = vpop.f32.mrf.mxu1  ;;  %v547_v14 = vpop.f32.mrf.mxu0 }
 0x170   : > { %v632_v15 = vadd.f32 %v1059_v11, %v631_v13  ;;  %v548_v16 = vadd.f32 %v1057_v12, %v547_v14 }
 0x171   : > { %v1110_v17 = vpop.f32.mrf.mxu1  ;;  %v1099_v18 = vpop.f32.mrf.mxu0 }
 0x172   : > { %1123 = vmatpush3.xpose.msk.msra.mxu1 %vm477_vm1, %v632_v15 }
 0x173   : > { %1127 = vmatprep.subr.mxu1 %v1475_v0 }
 0x175   : > { %1125 = vmatmul.mubr.msk.f32.vlgmr.msra.gmra.mxu1 %vm477_vm1, %v548_v16 }
 0x176   : > { %1129 = vmatprep.mubr.msk.f32.mxu1 %vm1476_vm0, %v1475_v0 }
 0x179   : > { %v715_v33 = vpop.f32.mrf.mxu0 }
 0x17a   : > { %v716_v34 = vadd.f32 %v1061_v32, %v715_v33 }
 0x17b   : > { %v1121_v35 = vpop.f32.mrf.mxu0 }
 0x17c   : > { %1128 = vmatpush3.msra.mxu1 %v716_v34 }
 0x235   : > { %v791_v24 = vpop.f32.mrf.mxu1 }
 0x236   : > { %v796_v25 = vsel %vm795_vm2, %v791_v24, -inf }
 0x237   : > { %797 = vmax.xlane.f32.xlu0 %v796_v25  ;;  %v1126_v26 = vpop.f32.mrf.mxu1 }
 0x2c0   : > { %v798_v27 = vpop.xlane.xlu0 %797 }
 0x2c1   : > { %v799_v28 = vsub.f32 %v791_v24, %v798_v27 }
 0x2c3   : > { %v800_v29 = vmul.f32 1.442695, %v799_v28 }
 0x2c5   : > { %1223 = vpow2.f32 %v800_v29 }
 0x2d2   : > { %v1224_v30 = vpop.eup %1223 }
 0x2d3   : > { %v802_v31 = vsel %vm795_vm2, %v1224_v30, 0.0 }
 0x2d4   : > { %803 = vadd.xlane.f32.xlu0 %v802_v31 }
 0x35d   : > { %v804_v36 = vpop.xlane.xlu0 %803 }
 0x35e   : > { %1225 = vrcp.f32 %v804_v36 }
 0x36b   : > { %v1226_v37 = vpop.eup %1225 }
 0x36c   : > { %v806_v38 = vmul.f32 %v1226_v37, %v1224_v30 }
 0x36e   : > { %1130 = vmatmul.mubr.msk.f32.vlgmr.msra.gmra.mxu1 %vm795_vm2, %v806_v38 }
 0x42e   : > { %v876_v39 = vpop.f32.mrf.mxu1 }
 0x42f   : > { %880 = vst.msk [vmem:[%s462_s24] sm:$0xff] %vm477_vm1, %v876_v39 }
 0x430   : > { %v1131_v40 = vpop.f32.mrf.mxu1 }
 0x431   : > { %1402 = shalt.err (!%p1399_p11)
}
 0x432   : > { %s1403_s19 = scalar_lea.hbm %s1791_s26, 128  ;;  %s1407_s15 = scalar_lea.hbm %s1896_s22, 256 }
 0x433   : > { %p1404_p5 = scmp.ne.s32.totalorder %s1791_s26, %s1403_s19  ;;  %p1408_p2 = scmp.lt.s32.totalorder %s1791_s26, %s1896_s22 }
 0x434   : > { %p1409_p13 = scmp.lt.s32.totalorder %s1407_s15, %s1403_s19 }
 0x435   : > { %p1405_p10 = pnand %p1404_p5, %p1897_p7 }
 0x436   : > { %p1410_p1 = por %p1409_p13, %p1408_p2 }
 0x437   : > { %p1406_p9 = pneg %p1405_p10 }
 0x439   : > { %p1411_p12 = pnand %p1410_p1, %p1406_p9 }
 0x43b   : > { %1414 = shalt.err (!%p1411_p12)
}
 0x43c   : > { %1150 = dma.vmem_to_hbm [thread:$0]  (%p1897_p7), %s1793_s21, 128, %s1791_s26, %s882_s14  }
 0x43d PF: > { %s1898_s23 = sld [smem:[#allocation19_spill]] }
 0x43e   : > { %s1899_s9 = sld [smem:[#allocation21_spill]] }
 0x43f   : > { %s1900_s30 = sld [smem:[#allocation20_spill]] }
 0x443   : > { %s907_s12 = sand.u32 1, %s1898_s23  }
 0x444   : > { %p1901_p0 = scmp.ne.s32.totalorder %s1899_s9, 0  ;;  %s908_s24 = scalar_lea.sflag [#allocation4], %s907_s12 }
 0x445   : > { %p1902_p3 = scmp.ge.s32.totalorder %s1900_s30, 2 }
 0x447   : > { %p1173_p6 = pnand %p1902_p3, %p1901_p0 }
 0x449   : > { %p1174_p4 = pneg %p1173_p6 }
 0x44b   : > { %1448 = dma.done.wait (%p1174_p4), %s908_s24, 128  }
 0x44c   : > { %1450 = vsyncadd (%p1174_p4), %s908_s24, 4294967168  ;;  %s1903_s12 = sld [smem:[#allocation22_spill]]  ;;  %s1905_s30 = smov %s1457_s10 }
 0x44d   : > { %s1904_s16 = sld [smem:[#allocation23_spill]]  ;;  %s1906_s10 = smov %s1461_s11 }
 0x452   : > { %p27_p8 = scmp.ge.s32.totalorder %s1903_s12, 4  }
 0x453   : > { %s1907_s11 = smov %s1904_s16 }
 0x454   :  { %29 = sbr.rel (!%p27_p8) target bundleno = 13 (0xd), region = 137 }
 0x459   :  { %913 = vsyncpa [#allocation3], 1 }
 0x45a   :  { %915 = vsyncpa [#allocation3 + $0x1], 1 }
 0x45b   :  { %916 = vsyncpa [#allocation6], 1 }
 0x45c   :  { %918 = vsyncpa [#allocation6 + $0x1], 1 }
 0x45d   :  { %919 = vsyncpa [#allocation9], 1 }
 0x45e   :  { %920 = vsyncpa [#allocation12], 1 }
 0x45f   :  { %921 = vsyncpa [#allocation4], 1 }
 0x460   :  { %923 = vsyncpa [#allocation4 + $0x1], 1 }

</bundles_post_ra>
